<compile_context>
chip_gen: v6e
topology: v6e:2x2x1
jax: 0.10.0
libtpu: 0.0.40
codegen_flags: <defaults>
</compile_context>

<pallas_src>
import functools

import jax
import jax.numpy as jnp
from jax.experimental import pallas as pl
from jax.experimental.pallas import tpu as pltpu

EPS = 1e-5

# Reduced DenseNet-169-style configuration (see TODO above).
GROWTH = 8
BN_SIZE = 4
INIT_FEATURES = 16
BLOCK_CONFIG = (2, 2, 2, 2)

_LANES = 128


def _round_up(x, m):
    return ((x + m - 1) // m) * m


def _default_row_tile():
    """Bigger row tiles on 128 MiB-VMEM chips (v5e/v6e), 512 on v7x (64 MiB)."""
    try:
        info = pltpu.get_tpu_info()
        vmem = int(info.vmem_capacity_bytes)
        return 512 if vmem <= (64 << 20) else 1024
    except Exception:  # pragma: no cover - conservative fallback
        return 512


_ROW_TILE = _default_row_tile()


def _row_plan(m, tile=None):
    """Return (tile_rows, padded_rows).

    Padding is only used when the row count is not sublane friendly; otherwise
    we rely on grid = cdiv(rows, tile) + Pallas boundary-block masking, so no
    extra HBM pad pass is materialized.
    """
    tile = tile or _ROW_TILE
    if m <= 8:
        return m, m                       # block row dim == full dim -> legal
    if m % 8 == 0:
        return min(tile, m), m
    mp = _round_up(m, 8)
    return min(tile, mp), mp


# --------------------------------------------------------------------------
# Kernel 1: 1x1-conv matmul with fused BN+ReLU prologue / epilogue (bf16 MXU)
# --------------------------------------------------------------------------
def _mm_kernel(a_ref, w_ref, si_ref, bi_ref, so_ref, bo_ref, o_ref, *, pre, post):
    a = a_ref[...]                                     # [TM, K]
    if pre:                                            # BN+ReLU on the conv input
        a = jnp.maximum(a.astype(jnp.float32) * si_ref[...] + bi_ref[...], 0.0)
    acc = jnp.dot(a.astype(jnp.bfloat16), w_ref[...],  # bf16 MXU, f32 accumulate
                  preferred_element_type=jnp.float32)
    if post:                                           # BN+ReLU on the conv output
        acc = jnp.maximum(acc * so_ref[...] + bo_ref[...], 0.0)
    o_ref[...] = acc.astype(o_ref.dtype)


def fused_pointwise_matmul(a, w_bf16, si=None, bi=None, so=None, bo=None,
                           pre=False, post=False, out_dtype=jnp.float32):
    """[M, K] @ [K, OC] with optional fused affine+ReLU pre/post."""
    m, k = a.shape
    oc = w_bf16.shape[1]
    if si is None:
        si = jnp.ones((1, k), jnp.float32)
    if bi is None:
        bi = jnp.zeros((1, k), jnp.float32)
    if so is None:
        so = jnp.ones((1, oc), jnp.float32)
    if bo is None:
        bo = jnp.zeros((1, oc), jnp.float32)
    tm, mp = _row_plan(m)
    if mp != m:
        a = jnp.pad(a, ((0, mp - m), (0, 0)))
    out = pl.pallas_call(
        functools.partial(_mm_kernel, pre=pre, post=post),
        out_shape=jax.ShapeDtypeStruct((mp, oc), out_dtype),
        grid=(pl.cdiv(mp, tm),),
        in_specs=[pl.BlockSpec((tm, k), lambda i: (i, 0)),
                  pl.BlockSpec((k, oc), lambda i: (0, 0)),
                  pl.BlockSpec((1, k), lambda i: (0, 0)),
                  pl.BlockSpec((1, k), lambda i: (0, 0)),
                  pl.BlockSpec((1, oc), lambda i: (0, 0)),
                  pl.BlockSpec((1, oc), lambda i: (0, 0))],
        out_specs=pl.BlockSpec((tm, oc), lambda i: (i, 0)),
        compiler_params=pltpu.CompilerParams(
            dimension_semantics=("parallel",)),
    )(a, w_bf16, si, bi, so, bo)
    return out if mp == m else out[:m]


# --------------------------------------------------------------------------
# Kernel 2: KxK stride-1 conv, tap accumulation from VMEM (no im2col in HBM)
# --------------------------------------------------------------------------
def _conv_taps_kernel(x_ref, w_ref, o_ref, *, shifts, out_len):
    # x_ref: [L, C] flattened padded image (one batch element)
    # w_ref: [T, C, OC] bf16 ; o_ref: [OUT_LEN, OC] f32 (wide-domain output)
    # Accumulate straight into the output VMEM block (no f32 temporaries).
    for t, sh in enumerate(shifts):
        a = x_ref[pl.ds(sh, out_len), :].astype(jnp.bfloat16)
        part = jnp.dot(a, w_ref[t], preferred_element_type=jnp.float32)
        if t == 0:
            o_ref[...] = part
        else:
            o_ref[...] += part
    # TODO(synk): store conv inputs as bf16 in HBM and cast the slab once per
    # step after validating packed-sublane shifted slices on all generations.


def conv_kxk_s1(x, w, pad):
    """Stride-1 KxK conv.  x: [N,H,W,C], w: [KH,KW,C,OC] (no bias)."""
    n, h, wd, c = x.shape
    kh, kw, _, oc = w.shape
    hp, wp = h + 2 * pad, wd + 2 * pad
    wp8 = _round_up(wp, 8)                 # sublane-aligned row stride for taps
    x = jnp.pad(x, ((0, 0), (pad, pad), (pad, wp8 - wd - pad), (0, 0)))
    oh, ow = hp - kh + 1, wp - kw + 1
    flat = x.reshape(n, hp * wp8, c)
    if kw > 1:
        flat = jnp.pad(flat, ((0, 0), (0, kw - 1), (0, 0)))   # tail rows for max shift
    flat_len = flat.shape[1]
    out_len = oh * wp8                                         # "wide" output rows
    shifts = tuple(dy * wp8 + dx for dy in range(kh) for dx in range(kw))
    wb = w.reshape(kh * kw, c, oc).astype(jnp.bfloat16)

    y = pl.pallas_call(
        functools.partial(_conv_taps_kernel, shifts=shifts, out_len=out_len),
        out_shape=jax.ShapeDtypeStruct((n, out_len, oc), jnp.float32),
        grid=(n,),
        in_specs=[pl.BlockSpec((None, flat_len, c), lambda i: (i, 0, 0)),
                  pl.BlockSpec((kh * kw, c, oc), lambda i: (0, 0, 0))],
        out_specs=pl.BlockSpec((None, out_len, oc), lambda i: (i, 0, 0)),
        compiler_params=pltpu.CompilerParams(
            dimension_semantics=("parallel",)),
    )(flat, wb)
    # TODO(synk): add an output-row-chunk grid axis (halo'd manual DMA) so both
    # v7x TensorCores get work at batch<=2 and VMEM stays bounded at 224x224.
    return y.reshape(n, oh, wp8, oc)[:, :, :ow, :]


def conv0_7x7_s2(x, w):
    """7x7 stride-2 pad-3 conv via space-to-depth -> stride-1 4x4 conv."""
    n, h, wd, c = x.shape
    oc = w.shape[-1]
    oh = (h + 6 - 7) // 2 + 1
    ow = (wd + 6 - 7) // 2 + 1
    hp, wp = h + 6, wd + 6
    hp2, wp2 = hp + (hp & 1), wp + (wp & 1)               # make padded dims even
    xp = jnp.pad(x, ((0, 0), (3, hp2 - h - 3), (3, wp2 - wd - 3), (0, 0)))
    # phase image: ph[n, Y, X, (py,px,c)] = xp[n, 2Y+py, 2X+px, c]
    ph = xp.reshape(n, hp2 // 2, 2, wp2 // 2, 2, c)
    ph = ph.transpose(0, 1, 3, 2, 4, 5).reshape(n, hp2 // 2, wp2 // 2, 4 * c)
    # phase weights: wph[qy, qx, (py,px,c)] = w[2qy+py, 2qx+px, c]  (zero past 7)
    w8 = jnp.pad(w, ((0, 1), (0, 1), (0, 0), (0, 0)))     # [8,8,c,oc]
    wph = w8.reshape(4, 2, 4, 2, c, oc).transpose(0, 2, 1, 3, 4, 5)
    wph = wph.reshape(4, 4, 4 * c, oc)
    y = conv_kxk_s1(ph, wph, pad=0)
    return y[:, :oh, :ow, :]


# --------------------------------------------------------------------------
# Kernel 3: lane-dense affine (BN) / dual BN+ReLU output
# --------------------------------------------------------------------------
def _affine_kernel(x_ref, s_ref, b_ref, o_ref, *, relu):
    y = x_ref[...] * s_ref[...] + b_ref[...]
    if relu:
        y = jnp.maximum(y, 0.0)
    o_ref[...] = y


def _affine_dual_kernel(x_ref, s_ref, b_ref, bn_ref, relu_ref):
    y = x_ref[...] * s_ref[...] + b_ref[...]
    bn_ref[...] = y
    relu_ref[...] = jnp.maximum(y, 0.0)


def _lane_dense(x2d, scale, shift):
    """[M, C] -> [M*C/128, 128] when C | 128 and 128 | M*C (scale/shift tiled)."""
    m, c = x2d.shape
    if (m * c) % _LANES == 0 and _LANES % c == 0:
        rep = _LANES // c
        return (x2d.reshape((m * c) // _LANES, _LANES),
                jnp.tile(scale, (1, rep)), jnp.tile(shift, (1, rep)))
    return x2d, scale, shift


def _affine_call(x2d, scale_1c, shift_1c, relu=False, dual=False):
    xd, s, b = _lane_dense(x2d, scale_1c, shift_1c)
    m, lanes = xd.shape
    tm, mp = _row_plan(m)
    if mp != m:
        xd = jnp.pad(xd, ((0, mp - m), (0, 0)))
    block = pl.BlockSpec((tm, lanes), lambda i: (i, 0))
    vec = pl.BlockSpec((1, lanes), lambda i: (0, 0))
    if dual:
        kern = _affine_dual_kernel
        out_shape = [jax.ShapeDtypeStruct((mp, lanes), jnp.float32)] * 2
        out_specs = [pl.BlockSpec((tm, lanes), lambda i: (i, 0))] * 2
    else:
        kern = functools.partial(_affine_kernel, relu=relu)
        out_shape = jax.ShapeDtypeStruct((mp, lanes), jnp.float32)
        out_specs = pl.BlockSpec((tm, lanes), lambda i: (i, 0))
    outs = pl.pallas_call(
        kern,
        out_shape=out_shape,
        grid=(pl.cdiv(mp, tm),),
        in_specs=[block, vec, vec],
        out_specs=out_specs,
        compiler_params=pltpu.CompilerParams(
            dimension_semantics=("parallel",)),
    )(xd, s, b)
    if dual:
        return outs[0][:m], outs[1][:m]
    return outs[:m]


def _fold_bn(p):
    scale = p["gamma"] / jnp.sqrt(p["var"] + EPS)
    shift = p["beta"] - p["mean"] * scale
    return scale, shift


def batchnorm(x, p, relu=False):
    c = x.shape[-1]
    scale, shift = _fold_bn(p)
    y = _affine_call(x.reshape(-1, c), scale[None], shift[None], relu=relu)
    return y.reshape(x.shape)


def batchnorm_dual(x, p):
    """One pass producing (BN(x), ReLU(BN(x))) — used for norm0 / relu0."""
    c = x.shape[-1]
    scale, shift = _fold_bn(p)
    bn, rl = _affine_call(x.reshape(-1, c), scale[None], shift[None], dual=True)
    return bn.reshape(x.shape), rl.reshape(x.shape)


# --------------------------------------------------------------------------
# Kernel 4: 3x3/s2 max pool via space-to-depth + in-kernel running max
# --------------------------------------------------------------------------
def _maxpool_taps_kernel(x_ref, o_ref, *, taps, out_len):
    # x_ref: [4, L, C] per-phase flattened padded image (one batch element)
    acc = None
    for p, sh in taps:
        v = x_ref[p, pl.ds(sh, out_len), :]
        acc = v if acc is None else jnp.maximum(acc, v)
    o_ref[...] = acc


def maxpool_3x3_s2_p1(x):
    """MaxPool2d(kernel=3, stride=2, padding=1) — no HBM window stack."""
    n, h, wd, c = x.shape
    oh = (h + 2 - 3) // 2 + 1
    ow = (wd + 2 - 3) // 2 + 1
    hq, wq = oh + 1, ow + 1                      # phase-image dims (+1 halo group)
    hp2, wp2 = 2 * hq, 2 * wq
    xp = jnp.pad(x, ((0, 0), (1, hp2 - h - 1), (1, wp2 - wd - 1), (0, 0)),
                 constant_values=-jnp.inf)
    # phases on the LEADING dim so each tap is a full-channel shifted slice
    ph = xp.reshape(n, hq, 2, wq, 2, c).transpose(0, 2, 4, 1, 3, 5)
    ph = ph.reshape(n, 4, hq * wq, c)
    ph = jnp.pad(ph, ((0, 0), (0, 0), (0, 8), (0, 0)))   # halo taps of dropped cols
    flat_len = ph.shape[2]
    out_len = oh * wq
    taps = tuple((((dy % 2) * 2 + (dx % 2)), (dy // 2) * wq + (dx // 2))
                 for dy in range(3) for dx in range(3))

    y = pl.pallas_call(
        functools.partial(_maxpool_taps_kernel, taps=taps, out_len=out_len),
        out_shape=jax.ShapeDtypeStruct((n, out_len, c), x.dtype),
        grid=(n,),
        in_specs=[pl.BlockSpec((None, 4, flat_len, c), lambda i: (i, 0, 0, 0))],
        out_specs=pl.BlockSpec((None, out_len, c), lambda i: (i, 0, 0)),
        compiler_params=pltpu.CompilerParams(
            dimension_semantics=("parallel",)),
    )(ph)
    return y.reshape(n, oh, wq, c)[:, :, :ow, :]


# --------------------------------------------------------------------------
# Kernel 5: fused BN + ReLU + 2x2/s2 average pool (for transitions)
# --------------------------------------------------------------------------
def _bn_relu_avgpool_kernel(x_ref, s_ref, b_ref, o_ref):
    # x_ref: [TM, 2, W2, 2, C]  (row-pair, col-pair view, no HBM relayout)
    s = s_ref[...]
    b = b_ref[...]
    acc = None
    for i in (0, 1):
        for j in (0, 1):
            v = x_ref[:, i, :, j, :].astype(jnp.float32)      # [TM, W2, C]
            v = jnp.maximum(v * s + b, 0.0)
            acc = v if acc is None else acc + v
    o_ref[...] = (acc * 0.25).astype(o_ref.dtype)


def bn_relu_avgpool2x2(x, scale_1c, shift_1c, out_dtype=jnp.bfloat16):
    n, h, wd, c = x.shape
    h2, w2 = h // 2, wd // 2
    x = x[:, :2 * h2, :2 * w2, :]                 # floor, like nn.AvgPool2d(2, 2)
    xr = x.reshape(n * h2, 2, w2, 2, c)           # pure reshape, no transpose
    m = n * h2
    tm, mp = _row_plan(m)
    if mp != m:
        xr = jnp.pad(xr, ((0, mp - m), (0, 0), (0, 0), (0, 0), (0, 0)))
    out = pl.pallas_call(
        _bn_relu_avgpool_kernel,
        out_shape=jax.ShapeDtypeStruct((mp, w2, c), out_dtype),
        grid=(pl.cdiv(mp, tm),),
        in_specs=[pl.BlockSpec((tm, 2, w2, 2, c), lambda i: (i, 0, 0, 0, 0)),
                  pl.BlockSpec((1, c), lambda i: (0, 0)),
                  pl.BlockSpec((1, c), lambda i: (0, 0))],
        out_specs=pl.BlockSpec((tm, w2, c), lambda i: (i, 0, 0)),
        compiler_params=pltpu.CompilerParams(
            dimension_semantics=("parallel",)),
    )(xr, scale_1c, shift_1c)
    out = out[:m] if mp != m else out
    return out.reshape(n, h2, w2, c)


# --------------------------------------------------------------------------
# Parameter init (deterministic, synthetic)
# --------------------------------------------------------------------------
def _conv_init(key, kh, kw, ic, oc):
    fan_in = kh * kw * ic
    return (jax.random.normal(key, (kh, kw, ic, oc), jnp.float32)
            / jnp.sqrt(jnp.float32(fan_in)))


def _bn_init(key, c):
    k1, k2, k3, k4 = jax.random.split(key, 4)
    return {
        "gamma": 1.0 + 0.1 * jax.random.normal(k1, (c,), jnp.float32),
        "beta": 0.1 * jax.random.normal(k2, (c,), jnp.float32),
        "mean": 0.1 * jax.random.normal(k3, (c,), jnp.float32),
        "var": 1.0 + 0.1 * jax.random.uniform(k4, (c,), jnp.float32),
    }


def init_params(key):
    keys = iter(jax.random.split(key, 256))
    p = {}
    p["conv0"] = _conv_init(next(keys), 7, 7, 3, INIT_FEATURES)
    p["norm0"] = _bn_init(next(keys), INIT_FEATURES)
    c = INIT_FEATURES
    for bi, n_layers in enumerate(BLOCK_CONFIG, start=1):
        layers = []
        for _ in range(n_layers):
            layers.append({
                "norm1": _bn_init(next(keys), c),
                "conv1": _conv_init(next(keys), 1, 1, c, BN_SIZE * GROWTH),
                "norm2": _bn_init(next(keys), BN_SIZE * GROWTH),
                "conv2": _conv_init(next(keys), 3, 3, BN_SIZE * GROWTH, GROWTH),
            })
            c += GROWTH
        p[f"denseblock{bi}"] = layers
        if bi != len(BLOCK_CONFIG):
            p[f"transition{bi}"] = {
                "norm": _bn_init(next(keys), c),
                "conv": _conv_init(next(keys), 1, 1, c, c // 2),
            }
            c //= 2
    p["norm5"] = _bn_init(next(keys), c)
    return p


# --------------------------------------------------------------------------
# Dense blocks on a preallocated channel slab (no per-layer concatenate)
# --------------------------------------------------------------------------
def dense_layer_growth(slab, c_act, lp):
    """One dense layer's GROWTH new channels from the block slab.

    The slab's inactive channels are zero and their BN scale/shift and conv1
    weight rows are zero-padded, so the result is exactly the concat-based
    layer output."""
    n, h, wd, c_tot = slab.shape
    s1, b1 = _fold_bn(lp["norm1"])
    s2, b2 = _fold_bn(lp["norm2"])
    padc = c_tot - c_act
    s1 = jnp.pad(s1, (0, padc))
    b1 = jnp.pad(b1, (0, padc))
    w1 = jnp.pad(lp["conv1"].reshape(c_act, -1),
                 ((0, padc), (0, 0))).astype(jnp.bfloat16)
    # norm1+relu (prologue) -> conv1 (1x1) -> norm2+relu (epilogue), one kernel
    hmid = fused_pointwise_matmul(slab.reshape(-1, c_tot), w1,
                                  s1[None], b1[None], s2[None], b2[None],
                                  pre=True, post=True, out_dtype=jnp.float32)
    hmid = hmid.reshape(n, h, wd, -1)
    return conv_kxk_s1(hmid, lp["conv2"], pad=1)        # [N,H,W,GROWTH]


def dense_block(x, layers):
    n, h, wd, c_in = x.shape
    c_tot = c_in + GROWTH * len(layers)
    slab = jnp.pad(x, ((0, 0), (0, 0), (0, 0), (0, c_tot - c_in)))
    c = c_in
    for lp in layers:
        y = dense_layer_growth(slab, c, lp)
        # TODO(synk): replace with an aliased Pallas channel-offset writeback
        # (out_spec channel block + input_output_aliases) once sub-128-lane
        # output blocks are expressible; the static update-slice is applied
        # in place by XLA and avoids the old O(L^2) concat passes today.
        slab = jax.lax.dynamic_update_slice(slab, y, (0, 0, 0, c))
        c += GROWTH
    return slab


def transition(x, tp):
    """norm -> relu -> 1x1 conv -> 2x2 avgpool, with the pool commuted before
    the (linear) 1x1 conv so the matmul runs on 4x fewer rows."""
    n, h, wd, c = x.shape
    s, b = _fold_bn(tp["norm"])
    pooled = bn_relu_avgpool2x2(x, s[None], b[None])          # bf16, [N,H/2,W/2,C]
    wt = tp["conv"].reshape(c, -1).astype(jnp.bfloat16)
    oc = wt.shape[1]
    y = fused_pointwise_matmul(pooled.reshape(-1, c), wt, out_dtype=jnp.float32)
    return y.reshape(n, h // 2, wd // 2, oc)


# --------------------------------------------------------------------------
# Encoder forward (mirrors `for _, v in features._modules.items()`)
# --------------------------------------------------------------------------
def encoder_forward(params, x_nchw):
    feats = [x_nchw]
    x = jnp.transpose(x_nchw, (0, 2, 3, 1))          # NCHW -> NHWC for kernels

    def rec(y):
        feats.append(jnp.transpose(y, (0, 3, 1, 2)).astype(jnp.float32))

    x = conv0_7x7_s2(x, params["conv0"]); rec(x)      # conv0
    bn, x = batchnorm_dual(x, params["norm0"])        # norm0 + relu0 fused
    rec(bn)                                           # norm0
    rec(x)                                            # relu0
    x = maxpool_3x3_s2_p1(x); rec(x)                  # pool0

    nb = len(BLOCK_CONFIG)
    for bi in range(1, nb + 1):
        x = dense_block(x, params[f"denseblock{bi}"])
        rec(x)                                        # denseblock{bi}
        if bi != nb:
            x = transition(x, params[f"transition{bi}"])
            rec(x)                                    # transition{bi}

    x = batchnorm(x, params["norm5"], relu=False); rec(x)   # norm5
    return feats


# --------------------------------------------------------------------------
if __name__ == "__main__":
    key = jax.random.PRNGKey(0)
    kp, kx = jax.random.split(key)
    params = init_params(kp)
    x = jax.random.normal(kx, (2, 3, 32, 32), jnp.float32)

    # --- conv kernels vs XLA reference (bf16 tolerance)
    xt = jax.random.normal(jax.random.PRNGKey(1), (2, 8, 8, 16), jnp.float32)
    wt = 0.1 * jax.random.normal(jax.random.PRNGKey(2), (3, 3, 16, 8), jnp.float32)
    got = conv_kxk_s1(xt, wt, pad=1)
    ref = jax.lax.conv_general_dilated(
        xt, wt, (1, 1), ((1, 1), (1, 1)),
        dimension_numbers=("NHWC", "HWIO", "NHWC"))
    assert got.shape == ref.shape
    assert float(jnp.max(jnp.abs(got - ref))) < 0.05 * (float(jnp.max(jnp.abs(ref))) + 1e-3)

    x0 = jax.random.normal(jax.random.PRNGKey(3), (2, 11, 13, 3), jnp.float32)
    w0 = 0.1 * jax.random.normal(jax.random.PRNGKey(4), (7, 7, 3, 16), jnp.float32)
    got0 = conv0_7x7_s2(x0, w0)
    ref0 = jax.lax.conv_general_dilated(
        x0, w0, (2, 2), ((3, 3), (3, 3)),
        dimension_numbers=("NHWC", "HWIO", "NHWC"))
    assert got0.shape == ref0.shape
    assert float(jnp.max(jnp.abs(got0 - ref0))) < 0.05 * (float(jnp.max(jnp.abs(ref0))) + 1e-3)

    # --- in-kernel max pool vs reduce_window (exact)
    xm = jax.random.normal(jax.random.PRNGKey(5), (2, 9, 11, 16), jnp.float32)
    gotm = maxpool_3x3_s2_p1(xm)
    refm = jax.lax.reduce_window(xm, -jnp.inf, jax.lax.max,
                                 (1, 3, 3, 1), (1, 2, 2, 1),
                                 [(0, 0), (1, 1), (1, 1), (0, 0)])
    assert gotm.shape == refm.shape
    assert float(jnp.max(jnp.abs(gotm - refm))) < 1e-5

    # --- transition (pool-before-conv linearity) vs reference
    kt = jax.random.split(jax.random.PRNGKey(6), 3)
    tpar = {"norm": _bn_init(kt[0], 16), "conv": _conv_init(kt[1], 1, 1, 16, 8)}
    xtr = jax.random.normal(kt[2], (2, 6, 6, 16), jnp.float32)
    gott = transition(xtr, tpar)
    st, bt = _fold_bn(tpar["norm"])
    u = jnp.maximum(xtr * st + bt, 0.0)
    v = jax.lax.conv_general_dilated(u, tpar["conv"], (1, 1), "VALID",
                                     dimension_numbers=("NHWC", "HWIO", "NHWC"))
    reft = jax.lax.reduce_window(v, 0.0, jax.lax.add, (1, 2, 2, 1),
                                 (1, 2, 2, 1), "VALID") * 0.25
    assert gott.shape == reft.shape
    assert float(jnp.max(jnp.abs(gott - reft))) < 0.05 * (float(jnp.max(jnp.abs(reft))) + 1e-3)

    # --- dense block (slab, no concat) vs reference
    kd = jax.random.split(jax.random.PRNGKey(7), 9)
    layers = []
    cc = 16
    for li in range(2):
        layers.append({"norm1": _bn_init(kd[4 * li + 0], cc),
                       "conv1": _conv_init(kd[4 * li + 1], 1, 1, cc, BN_SIZE * GROWTH),
                       "norm2": _bn_init(kd[4 * li + 2], BN_SIZE * GROWTH),
                       "conv2": _conv_init(kd[4 * li + 3], 3, 3, BN_SIZE * GROWTH, GROWTH)})
        cc += GROWTH
    xd = jax.random.normal(kd[8], (2, 6, 6, 16), jnp.float32)
    gotd = dense_block(xd, layers)
    refd = xd
    for lp in layers:
        s1, b1 = _fold_bn(lp["norm1"]); s2, b2 = _fold_bn(lp["norm2"])
        h1 = jnp.maximum(refd * s1 + b1, 0.0)
        h1 = jax.lax.conv_general_dilated(h1, lp["conv1"], (1, 1), "VALID",
                                          dimension_numbers=("NHWC", "HWIO", "NHWC"))
        h2 = jnp.maximum(h1 * s2 + b2, 0.0)
        yv = jax.lax.conv_general_dilated(h2, lp["conv2"], (1, 1), ((1, 1), (1, 1)),
                                          dimension_numbers=("NHWC", "HWIO", "NHWC"))
        refd = jnp.concatenate([refd, yv], axis=-1)
    assert gotd.shape == refd.shape
    assert float(jnp.max(jnp.abs(gotd - refd))) < 0.05 * (float(jnp.max(jnp.abs(refd))) + 1e-3)

    # --- full encoder
    feats = jax.jit(encoder_forward)(params, x)
    feats = jax.block_until_ready(feats)

    # input + (conv0, norm0, relu0, pool0) + 4 blocks + 3 transitions + norm5
    assert len(feats) == 1 + 4 + len(BLOCK_CONFIG) + (len(BLOCK_CONFIG) - 1) + 1
    assert feats[0].shape == (2, 3, 32, 32)
    assert feats[1].shape == (2, INIT_FEATURES, 16, 16)   # conv0
    assert feats[4].shape == (2, INIT_FEATURES, 8, 8)     # pool0
    assert feats[-1].shape == (2, 32, 1, 1)               # norm5
    assert all(f.dtype == jnp.float32 for f in feats)
    assert all(bool(jnp.isfinite(f).all()) for f in feats)

    print("KERNEL_OK")
</pallas_src>

<mosaic_0001>
module attributes {stable_mosaic.version = 11 : i64} {
  func.func @_conv_taps_kernel(%arg0: i32, %arg1: memref<1x162x16xf32, #tpu.memory_space<vmem>>, %arg2: memref<9x16x8xbf16, #tpu.memory_space<vmem>>, %arg3: memref<1x128x8xf32, #tpu.memory_space<vmem>>) attributes {dimension_semantics = [#tpu.dimension_semantics<parallel>], iteration_bounds = array<i64: 2>, scalar_prefetch = 0 : i64, scratch_operands = 0 : i64, tpu.core_type = #tpu.core_type<tc>, window_params = [{transform_indices = @transform_0, window_bounds = array<i64: 1, 162, 16>}, {pipeline_mode = #tpu.pipeline_mode<synchronous>, transform_indices = @transform_1, window_bounds = array<i64: 9, 16, 8>}, {transform_indices = @transform_2, window_bounds = array<i64: 1, 128, 8>}]} {
    %c0 = arith.constant 0 : index
    %c0_0 = arith.constant 0 : index
    %c0_1 = arith.constant 0 : index
    %0 = vector.load %arg1[%c0, %c0_0, %c0_1] : memref<1x162x16xf32, #tpu.memory_space<vmem>>, vector<1x128x16xf32>
    %1 = vector.shape_cast %0 : vector<1x128x16xf32> to vector<128x16xf32>
    %2 = arith.truncf %1 : vector<128x16xf32> to vector<128x16xbf16>
    %c0_2 = arith.constant 0 : index
    %c0_3 = arith.constant 0 : index
    %c0_4 = arith.constant 0 : index
    %3 = vector.load %arg2[%c0_2, %c0_3, %c0_4] : memref<9x16x8xbf16, #tpu.memory_space<vmem>>, vector<1x16x8xbf16>
    %4 = vector.shape_cast %3 : vector<1x16x8xbf16> to vector<16x8xbf16>
    %cst = arith.constant dense<0.000000e+00> : vector<128x8xf32>
    %5 = tpu.matmul %2, %4, %cst {dimension_numbers = #tpu.dot_dimension_numbers<[1], [0], [0], [1], [0, 0, 1, 1], [], []>} : vector<128x16xbf16>, vector<16x8xbf16>, vector<128x8xf32> -> vector<128x8xf32>
    %c0_5 = arith.constant 0 : index
    %c0_6 = arith.constant 0 : index
    %c0_7 = arith.constant 0 : index
    %6 = vector.load %arg3[%c0_5, %c0_6, %c0_7] : memref<1x128x8xf32, #tpu.memory_space<vmem>>, vector<1x128x8xf32>
    %7 = vector.shape_cast %6 : vector<1x128x8xf32> to vector<128x8xf32>
    %8 = vector.shape_cast %5 : vector<128x8xf32> to vector<1x128x8xf32>
    tpu.vector_store %arg3[%c0_5, %c0_6, %c0_7], %8 {strides = array<i32>} : memref<1x128x8xf32, #tpu.memory_space<vmem>>, vector<1x128x8xf32>,
    %c0_8 = arith.constant 0 : index
    %c1 = arith.constant 1 : index
    %c0_9 = arith.constant 0 : index
    %9 = vector.load %arg1[%c0_8, %c1, %c0_9] : memref<1x162x16xf32, #tpu.memory_space<vmem>>, vector<1x128x16xf32>
    %10 = vector.shape_cast %9 : vector<1x128x16xf32> to vector<128x16xf32>
    %11 = arith.truncf %10 : vector<128x16xf32> to vector<128x16xbf16>
    %c1_10 = arith.constant 1 : index
    %c0_11 = arith.constant 0 : index
    %c0_12 = arith.constant 0 : index
    %12 = vector.load %arg2[%c1_10, %c0_11, %c0_12] : memref<9x16x8xbf16, #tpu.memory_space<vmem>>, vector<1x16x8xbf16>
    %13 = vector.shape_cast %12 : vector<1x16x8xbf16> to vector<16x8xbf16>
    %cst_13 = arith.constant dense<0.000000e+00> : vector<128x8xf32>
    %14 = tpu.matmul %11, %13, %cst_13 {dimension_numbers = #tpu.dot_dimension_numbers<[1], [0], [0], [1], [0, 0, 1, 1], [], []>} : vector<128x16xbf16>, vector<16x8xbf16>, vector<128x8xf32> -> vector<128x8xf32>
    %c0_14 = arith.constant 0 : index
    %c0_15 = arith.constant 0 : index
    %c0_16 = arith.constant 0 : index
    %15 = vector.load %arg3[%c0_14, %c0_15, %c0_16] : memref<1x128x8xf32, #tpu.memory_space<vmem>>, vector<1x128x8xf32>
    %16 = vector.shape_cast %15 : vector<1x128x8xf32> to vector<128x8xf32>
    %17 = arith.addf %16, %14 : vector<128x8xf32>
    %c0_17 = arith.constant 0 : index
    %c0_18 = arith.constant 0 : index
    %c0_19 = arith.constant 0 : index
    %18 = vector.load %arg3[%c0_17, %c0_18, %c0_19] : memref<1x128x8xf32, #tpu.memory_space<vmem>>, vector<1x128x8xf32>
    %19 = vector.shape_cast %18 : vector<1x128x8xf32> to vector<128x8xf32>
    %20 = vector.shape_cast %17 : vector<128x8xf32> to vector<1x128x8xf32>
    tpu.vector_store %arg3[%c0_17, %c0_18, %c0_19], %20 {strides = array<i32>} : memref<1x128x8xf32, #tpu.memory_space<vmem>>, vector<1x128x8xf32>,
    %c0_20 = arith.constant 0 : index
    %c2 = arith.constant 2 : index
    %c0_21 = arith.constant 0 : index
    %21 = vector.load %arg1[%c0_20, %c2, %c0_21] : memref<1x162x16xf32, #tpu.memory_space<vmem>>, vector<1x128x16xf32>
    %22 = vector.shape_cast %21 : vector<1x128x16xf32> to vector<128x16xf32>
    %23 = arith.truncf %22 : vector<128x16xf32> to vector<128x16xbf16>
    %c2_22 = arith.constant 2 : index
    %c0_23 = arith.constant 0 : index
    %c0_24 = arith.constant 0 : index
    %24 = vector.load %arg2[%c2_22, %c0_23, %c0_24] : memref<9x16x8xbf16, #tpu.memory_space<vmem>>, vector<1x16x8xbf16>
    %25 = vector.shape_cast %24 : vector<1x16x8xbf16> to vector<16x8xbf16>
    %cst_25 = arith.constant dense<0.000000e+00> : vector<128x8xf32>
    %26 = tpu.matmul %23, %25, %cst_25 {dimension_numbers = #tpu.dot_dimension_numbers<[1], [0], [0], [1], [0, 0, 1, 1], [], []>} : vector<128x16xbf16>, vector<16x8xbf16>, vector<128x8xf32> -> vector<128x8xf32>
    %c0_26 = arith.constant 0 : index
    %c0_27 = arith.constant 0 : index
    %c0_28 = arith.constant 0 : index
    %27 = vector.load %arg3[%c0_26, %c0_27, %c0_28] : memref<1x128x8xf32, #tpu.memory_space<vmem>>, vector<1x128x8xf32>
    %28 = vector.shape_cast %27 : vector<1x128x8xf32> to vector<128x8xf32>
    %29 = arith.addf %28, %26 : vector<128x8xf32>
    %c0_29 = arith.constant 0 : index
    %c0_30 = arith.constant 0 : index
    %c0_31 = arith.constant 0 : index
    %30 = vector.load %arg3[%c0_29, %c0_30, %c0_31] : memref<1x128x8xf32, #tpu.memory_space<vmem>>, vector<1x128x8xf32>
    %31 = vector.shape_cast %30 : vector<1x128x8xf32> to vector<128x8xf32>
    %32 = vector.shape_cast %29 : vector<128x8xf32> to vector<1x128x8xf32>
    tpu.vector_store %arg3[%c0_29, %c0_30, %c0_31], %32 {strides = array<i32>} : memref<1x128x8xf32, #tpu.memory_space<vmem>>, vector<1x128x8xf32>,
    %c0_32 = arith.constant 0 : index
    %c16 = arith.constant 16 : index
    %c0_33 = arith.constant 0 : index
    %33 = vector.load %arg1[%c0_32, %c16, %c0_33] : memref<1x162x16xf32, #tpu.memory_space<vmem>>, vector<1x128x16xf32>
    %34 = vector.shape_cast %33 : vector<1x128x16xf32> to vector<128x16xf32>
    %35 = arith.truncf %34 : vector<128x16xf32> to vector<128x16xbf16>
    %c3 = arith.constant 3 : index
    %c0_34 = arith.constant 0 : index
    %c0_35 = arith.constant 0 : index
    %36 = vector.load %arg2[%c3, %c0_34, %c0_35] : memref<9x16x8xbf16, #tpu.memory_space<vmem>>, vector<1x16x8xbf16>
    %37 = vector.shape_cast %36 : vector<1x16x8xbf16> to vector<16x8xbf16>
    %cst_36 = arith.constant dense<0.000000e+00> : vector<128x8xf32>
    %38 = tpu.matmul %35, %37, %cst_36 {dimension_numbers = #tpu.dot_dimension_numbers<[1], [0], [0], [1], [0, 0, 1, 1], [], []>} : vector<128x16xbf16>, vector<16x8xbf16>, vector<128x8xf32> -> vector<128x8xf32>
    %c0_37 = arith.constant 0 : index
    %c0_38 = arith.constant 0 : index
    %c0_39 = arith.constant 0 : index
    %39 = vector.load %arg3[%c0_37, %c0_38, %c0_39] : memref<1x128x8xf32, #tpu.memory_space<vmem>>, vector<1x128x8xf32>
    %40 = vector.shape_cast %39 : vector<1x128x8xf32> to vector<128x8xf32>
    %41 = arith.addf %40, %38 : vector<128x8xf32>
    %c0_40 = arith.constant 0 : index
    %c0_41 = arith.constant 0 : index
    %c0_42 = arith.constant 0 : index
    %42 = vector.load %arg3[%c0_40, %c0_41, %c0_42] : memref<1x128x8xf32, #tpu.memory_space<vmem>>, vector<1x128x8xf32>
    %43 = vector.shape_cast %42 : vector<1x128x8xf32> to vector<128x8xf32>
    %44 = vector.shape_cast %41 : vector<128x8xf32> to vector<1x128x8xf32>
    tpu.vector_store %arg3[%c0_40, %c0_41, %c0_42], %44 {strides = array<i32>} : memref<1x128x8xf32, #tpu.memory_space<vmem>>, vector<1x128x8xf32>,
    %c0_43 = arith.constant 0 : index
    %c17 = arith.constant 17 : index
    %c0_44 = arith.constant 0 : index
    %45 = vector.load %arg1[%c0_43, %c17, %c0_44] : memref<1x162x16xf32, #tpu.memory_space<vmem>>, vector<1x128x16xf32>
    %46 = vector.shape_cast %45 : vector<1x128x16xf32> to vector<128x16xf32>
    %47 = arith.truncf %46 : vector<128x16xf32> to vector<128x16xbf16>
    %c4 = arith.constant 4 : index
    %c0_45 = arith.constant 0 : index
    %c0_46 = arith.constant 0 : index
    %48 = vector.load %arg2[%c4, %c0_45, %c0_46] : memref<9x16x8xbf16, #tpu.memory_space<vmem>>, vector<1x16x8xbf16>
    %49 = vector.shape_cast %48 : vector<1x16x8xbf16> to vector<16x8xbf16>
    %cst_47 = arith.constant dense<0.000000e+00> : vector<128x8xf32>
    %50 = tpu.matmul %47, %49, %cst_47 {dimension_numbers = #tpu.dot_dimension_numbers<[1], [0], [0], [1], [0, 0, 1, 1], [], []>} : vector<128x16xbf16>, vector<16x8xbf16>, vector<128x8xf32> -> vector<128x8xf32>
    %c0_48 = arith.constant 0 : index
    %c0_49 = arith.constant 0 : index
    %c0_50 = arith.constant 0 : index
    %51 = vector.load %arg3[%c0_48, %c0_49, %c0_50] : memref<1x128x8xf32, #tpu.memory_space<vmem>>, vector<1x128x8xf32>
    %52 = vector.shape_cast %51 : vector<1x128x8xf32> to vector<128x8xf32>
    %53 = arith.addf %52, %50 : vector<128x8xf32>
    %c0_51 = arith.constant 0 : index
    %c0_52 = arith.constant 0 : index
    %c0_53 = arith.constant 0 : index
    %54 = vector.load %arg3[%c0_51, %c0_52, %c0_53] : memref<1x128x8xf32, #tpu.memory_space<vmem>>, vector<1x128x8xf32>
    %55 = vector.shape_cast %54 : vector<1x128x8xf32> to vector<128x8xf32>
    %56 = vector.shape_cast %53 : vector<128x8xf32> to vector<1x128x8xf32>
    tpu.vector_store %arg3[%c0_51, %c0_52, %c0_53], %56 {strides = array<i32>} : memref<1x128x8xf32, #tpu.memory_space<vmem>>, vector<1x128x8xf32>,
    %c0_54 = arith.constant 0 : index
    %c18 = arith.constant 18 : index
    %c0_55 = arith.constant 0 : index
    %57 = vector.load %arg1[%c0_54, %c18, %c0_55] : memref<1x162x16xf32, #tpu.memory_space<vmem>>, vector<1x128x16xf32>
    %58 = vector.shape_cast %57 : vector<1x128x16xf32> to vector<128x16xf32>
    %59 = arith.truncf %58 : vector<128x16xf32> to vector<128x16xbf16>
    %c5 = arith.constant 5 : index
    %c0_56 = arith.constant 0 : index
    %c0_57 = arith.constant 0 : index
    %60 = vector.load %arg2[%c5, %c0_56, %c0_57] : memref<9x16x8xbf16, #tpu.memory_space<vmem>>, vector<1x16x8xbf16>
    %61 = vector.shape_cast %60 : vector<1x16x8xbf16> to vector<16x8xbf16>
    %cst_58 = arith.constant dense<0.000000e+00> : vector<128x8xf32>
    %62 = tpu.matmul %59, %61, %cst_58 {dimension_numbers = #tpu.dot_dimension_numbers<[1], [0], [0], [1], [0, 0, 1, 1], [], []>} : vector<128x16xbf16>, vector<16x8xbf16>, vector<128x8xf32> -> vector<128x8xf32>
    %c0_59 = arith.constant 0 : index
    %c0_60 = arith.constant 0 : index
    %c0_61 = arith.constant 0 : index
    %63 = vector.load %arg3[%c0_59, %c0_60, %c0_61] : memref<1x128x8xf32, #tpu.memory_space<vmem>>, vector<1x128x8xf32>
    %64 = vector.shape_cast %63 : vector<1x128x8xf32> to vector<128x8xf32>
    %65 = arith.addf %64, %62 : vector<128x8xf32>
    %c0_62 = arith.constant 0 : index
    %c0_63 = arith.constant 0 : index
    %c0_64 = arith.constant 0 : index
    %66 = vector.load %arg3[%c0_62, %c0_63, %c0_64] : memref<1x128x8xf32, #tpu.memory_space<vmem>>, vector<1x128x8xf32>
    %67 = vector.shape_cast %66 : vector<1x128x8xf32> to vector<128x8xf32>
    %68 = vector.shape_cast %65 : vector<128x8xf32> to vector<1x128x8xf32>
    tpu.vector_store %arg3[%c0_62, %c0_63, %c0_64], %68 {strides = array<i32>} : memref<1x128x8xf32, #tpu.memory_space<vmem>>, vector<1x128x8xf32>,
    %c0_65 = arith.constant 0 : index
    %c32 = arith.constant 32 : index
    %c0_66 = arith.constant 0 : index
    %69 = vector.load %arg1[%c0_65, %c32, %c0_66] : memref<1x162x16xf32, #tpu.memory_space<vmem>>, vector<1x128x16xf32>
    %70 = vector.shape_cast %69 : vector<1x128x16xf32> to vector<128x16xf32>
    %71 = arith.truncf %70 : vector<128x16xf32> to vector<128x16xbf16>
    %c6 = arith.constant 6 : index
    %c0_67 = arith.constant 0 : index
    %c0_68 = arith.constant 0 : index
    %72 = vector.load %arg2[%c6, %c0_67, %c0_68] : memref<9x16x8xbf16, #tpu.memory_space<vmem>>, vector<1x16x8xbf16>
    %73 = vector.shape_cast %72 : vector<1x16x8xbf16> to vector<16x8xbf16>
    %cst_69 = arith.constant dense<0.000000e+00> : vector<128x8xf32>
    %74 = tpu.matmul %71, %73, %cst_69 {dimension_numbers = #tpu.dot_dimension_numbers<[1], [0], [0], [1], [0, 0, 1, 1], [], []>} : vector<128x16xbf16>, vector<16x8xbf16>, vector<128x8xf32> -> vector<128x8xf32>
    %c0_70 = arith.constant 0 : index
    %c0_71 = arith.constant 0 : index
    %c0_72 = arith.constant 0 : index
    %75 = vector.load %arg3[%c0_70, %c0_71, %c0_72] : memref<1x128x8xf32, #tpu.memory_space<vmem>>, vector<1x128x8xf32>
    %76 = vector.shape_cast %75 : vector<1x128x8xf32> to vector<128x8xf32>
    %77 = arith.addf %76, %74 : vector<128x8xf32>
    %c0_73 = arith.constant 0 : index
    %c0_74 = arith.constant 0 : index
    %c0_75 = arith.constant 0 : index
    %78 = vector.load %arg3[%c0_73, %c0_74, %c0_75] : memref<1x128x8xf32, #tpu.memory_space<vmem>>, vector<1x128x8xf32>
    %79 = vector.shape_cast %78 : vector<1x128x8xf32> to vector<128x8xf32>
    %80 = vector.shape_cast %77 : vector<128x8xf32> to vector<1x128x8xf32>
    tpu.vector_store %arg3[%c0_73, %c0_74, %c0_75], %80 {strides = array<i32>} : memref<1x128x8xf32, #tpu.memory_space<vmem>>, vector<1x128x8xf32>,
    %c0_76 = arith.constant 0 : index
    %c33 = arith.constant 33 : index
    %c0_77 = arith.constant 0 : index
    %81 = vector.load %arg1[%c0_76, %c33, %c0_77] : memref<1x162x16xf32, #tpu.memory_space<vmem>>, vector<1x128x16xf32>
    %82 = vector.shape_cast %81 : vector<1x128x16xf32> to vector<128x16xf32>
    %83 = arith.truncf %82 : vector<128x16xf32> to vector<128x16xbf16>
    %c7 = arith.constant 7 : index
    %c0_78 = arith.constant 0 : index
    %c0_79 = arith.constant 0 : index
    %84 = vector.load %arg2[%c7, %c0_78, %c0_79] : memref<9x16x8xbf16, #tpu.memory_space<vmem>>, vector<1x16x8xbf16>
    %85 = vector.shape_cast %84 : vector<1x16x8xbf16> to vector<16x8xbf16>
    %cst_80 = arith.constant dense<0.000000e+00> : vector<128x8xf32>
    %86 = tpu.matmul %83, %85, %cst_80 {dimension_numbers = #tpu.dot_dimension_numbers<[1], [0], [0], [1], [0, 0, 1, 1], [], []>} : vector<128x16xbf16>, vector<16x8xbf16>, vector<128x8xf32> -> vector<128x8xf32>
    %c0_81 = arith.constant 0 : index
    %c0_82 = arith.constant 0 : index
    %c0_83 = arith.constant 0 : index
    %87 = vector.load %arg3[%c0_81, %c0_82, %c0_83] : memref<1x128x8xf32, #tpu.memory_space<vmem>>, vector<1x128x8xf32>
    %88 = vector.shape_cast %87 : vector<1x128x8xf32> to vector<128x8xf32>
    %89 = arith.addf %88, %86 : vector<128x8xf32>
    %c0_84 = arith.constant 0 : index
    %c0_85 = arith.constant 0 : index
    %c0_86 = arith.constant 0 : index
    %90 = vector.load %arg3[%c0_84, %c0_85, %c0_86] : memref<1x128x8xf32, #tpu.memory_space<vmem>>, vector<1x128x8xf32>
    %91 = vector.shape_cast %90 : vector<1x128x8xf32> to vector<128x8xf32>
    %92 = vector.shape_cast %89 : vector<128x8xf32> to vector<1x128x8xf32>
    tpu.vector_store %arg3[%c0_84, %c0_85, %c0_86], %92 {strides = array<i32>} : memref<1x128x8xf32, #tpu.memory_space<vmem>>, vector<1x128x8xf32>,
    %c0_87 = arith.constant 0 : index
    %c34 = arith.constant 34 : index
    %c0_88 = arith.constant 0 : index
    %93 = vector.load %arg1[%c0_87, %c34, %c0_88] : memref<1x162x16xf32, #tpu.memory_space<vmem>>, vector<1x128x16xf32>
    %94 = vector.shape_cast %93 : vector<1x128x16xf32> to vector<128x16xf32>
    %95 = arith.truncf %94 : vector<128x16xf32> to vector<128x16xbf16>
    %c8 = arith.constant 8 : index
    %c0_89 = arith.constant 0 : index
    %c0_90 = arith.constant 0 : index
    %96 = vector.load %arg2[%c8, %c0_89, %c0_90] : memref<9x16x8xbf16, #tpu.memory_space<vmem>>, vector<1x16x8xbf16>
    %97 = vector.shape_cast %96 : vector<1x16x8xbf16> to vector<16x8xbf16>
    %cst_91 = arith.constant dense<0.000000e+00> : vector<128x8xf32>
    %98 = tpu.matmul %95, %97, %cst_91 {dimension_numbers = #tpu.dot_dimension_numbers<[1], [0], [0], [1], [0, 0, 1, 1], [], []>} : vector<128x16xbf16>, vector<16x8xbf16>, vector<128x8xf32> -> vector<128x8xf32>
    %c0_92 = arith.constant 0 : index
    %c0_93 = arith.constant 0 : index
    %c0_94 = arith.constant 0 : index
    %99 = vector.load %arg3[%c0_92, %c0_93, %c0_94] : memref<1x128x8xf32, #tpu.memory_space<vmem>>, vector<1x128x8xf32>
    %100 = vector.shape_cast %99 : vector<1x128x8xf32> to vector<128x8xf32>
    %101 = arith.addf %100, %98 : vector<128x8xf32>
    %c0_95 = arith.constant 0 : index
    %c0_96 = arith.constant 0 : index
    %c0_97 = arith.constant 0 : index
    %102 = vector.load %arg3[%c0_95, %c0_96, %c0_97] : memref<1x128x8xf32, #tpu.memory_space<vmem>>, vector<1x128x8xf32>
    %103 = vector.shape_cast %102 : vector<1x128x8xf32> to vector<128x8xf32>
    %104 = vector.shape_cast %101 : vector<128x8xf32> to vector<1x128x8xf32>
    tpu.vector_store %arg3[%c0_95, %c0_96, %c0_97], %104 {strides = array<i32>} : memref<1x128x8xf32, #tpu.memory_space<vmem>>, vector<1x128x8xf32>,
    return
  }
  func.func @transform_0(%arg0: i32) -> (i32, i32, i32) {
    %c0_i32 = arith.constant 0 : i32
    %c0_i32_0 = arith.constant 0 : i32
    %c0_i32_1 = arith.constant 0 : i32
    return %arg0, %c0_i32, %c0_i32_0 : i32, i32, i32
  }
  func.func @transform_1(%arg0: i32) -> (i32, i32, i32) {
    %c0_i32 = arith.constant 0 : i32
    %c0_i32_0 = arith.constant 0 : i32
    %c0_i32_1 = arith.constant 0 : i32
    %c0_i32_2 = arith.constant 0 : i32
    return %c0_i32, %c0_i32_0, %c0_i32_1 : i32, i32, i32
  }
  func.func @transform_2(%arg0: i32) -> (i32, i32, i32) {
    %c0_i32 = arith.constant 0 : i32
    %c0_i32_0 = arith.constant 0 : i32
    %c0_i32_1 = arith.constant 0 : i32
    return %arg0, %c0_i32, %c0_i32_0 : i32, i32, i32
  }
}

</mosaic_0001>

<bundles_post_ra>
// kernel: tpu_custom_call.1
= control target key start
LH: loop header
LB: loop body
LE: loop exit
PB: predicated region body
PF: predicated region fallthrough
CT: control target
= control target key end

     0   :  { %s2381_s9 = smov 0   ;;  %s3079_s0 = inlined_call_operand.vmem [shape: f32[2,162,16], index: 0, kind: input, shape index: {}]   ;;  %s3080_s1 = inlined_call_operand.vmem [shape: bf16[9,16,8], index: 1, kind: input, shape index: {}]   ;;  %s3081_s2 = inlined_call_operand.vmem [shape: f32[2,128,8], index: 2, kind: output, shape index: {}]  }
   0x1 LB: > { %s1987_s10 = sadd.s32 4294967295, %s2364_s9   ;;  %p1991_p0 = scmp.ge.s32.totalorder %s2364_s9, 1  ;;  %s2364_s9 = sphi %s2381_s9, %s12_s9  }
   0x2   : > { %p112_p1 = scmp.lt.s32.totalorder %s2364_s9, 3 }
   0x4   : > { %p113_p2 = pnand %p1991_p0, %p112_p1 }
   0x5   : > { %p134_p3 = scmp.lt.s32.totalorder (!%p113_p2), %s1987_s10, 1 }
   0x6   : > { %116 = sbr.rel (%p113_p2) target bundleno = 367 (0x16f), region = 28 }
   0xb   : > { %v2349_v0 = vld [vmem:[%s3080_s1] sm:$0xff]   ;;  %v2350_v1 = vld [vmem:[%s3080_s1 + $0x8] sm:$0xff]   ;;  %s3083_s10 = smov (!%p134_p3, %s1987_s10), 1  ;;  %v2351_v2 = vld [vmem:[%s3080_s1 + $0x10] sm:$0xff]   ;;  %vm177_vm0 = vcmask 130048   ;;  %vm299_vm1 = vcmask 64512  }
   0xc   : > { %2338 = vmatprep.subr.bf16.mxu1 %v2349_v0  ;;  %2176 = vmatprep.subr.bf16.mxu0 %v2349_v0  ;;  %s2340_s17 = smul.u32 168, %s3083_s10  ;;  %v2352_v17 = vld [vmem:[%s3080_s1 + $0x18] sm:$0xff]   ;;  %v2353_v21 = vld [vmem:[%s3080_s1 + $0x20] sm:$0xff]   ;;  %v2354_v47 = vld [vmem:[%s3080_s1 + $0x28] sm:$0xff]   ;;  %s2094_s5 = sshll.u32 %s3083_s10, 7 }
   0xd   : > { %2339 = vmatpush3.bf16.msra.mxu1 %v2349_v0  ;;  %2177 = vmatpush3.bf16.msra.mxu0 %v2349_v0  ;;  %v2355_v48 = vld [vmem:[%s3080_s1 + $0x30] sm:$0xff]   ;;  %s2658_s8 = scalar_lea.vmem %s3081_s2, %s2094_s5 }
   0xe   : > { %2194 = vmatprep.subr.bf16.mxu1 %v2350_v1  ;;  %2212 = vmatprep.subr.bf16.mxu0 %v2351_v2  ;;  %s2404_s20 = scalar_lea.vmem %s3079_s0, %s2340_s17 }
   0xf   : > { %v153_v3 = vld [vmem:[%s2404_s20 + $0x40] sm:$0xff]  ;;  %v154_v4 = vld [vmem:[%s2404_s20 + $0x48] sm:$0xff]  ;;  %v155_v5 = vld [vmem:[%s2404_s20 + $0x50] sm:$0xff] }
  0x10   : > { %v2409_v6 = vpack.c.bf16 %v154_v4, %v153_v3  ;;  %v156_v7 = vld [vmem:[%s2404_s20 + $0x58] sm:$0xff]  ;;  %v145_v8 = vld [vmem:[%s2404_s20] sm:$0xff]  ;;  %v146_v9 = vld [vmem:[%s2404_s20 + $0x8] sm:$0xff] }
  0x11   : > { %v2414_v10 = vpack.c.bf16 %v156_v7, %v155_v5  ;;  %v161_v11 = vpack.c.bf16 %v146_v9, %v145_v8  ;;  %v147_v12 = vld [vmem:[%s2404_s20 + $0x10] sm:$0xff]  ;;  %v148_v13 = vld [vmem:[%s2404_s20 + $0x18] sm:$0xff]  ;;  %v157_v14 = vld [vmem:[%s2404_s20 + $0x60] sm:$0xff] }
  0x12   : > { %2186 = vmatprep.mubr.msk.bf16.mxu1 %vm177_vm0, %v2409_v6  ;;  %v2421_v15 = vpack.c.bf16 %v148_v13, %v147_v12  ;;  %v158_v16 = vld [vmem:[%s2404_s20 + $0x68] sm:$0xff]  ;;  %v149_v19 = vld [vmem:[%s2404_s20 + $0x20] sm:$0xff]  ;;  %v159_v22 = vld [vmem:[%s2404_s20 + $0x70] sm:$0xff] }
  0x13   : > { %2187 = vmatmul.mubr.msk.bf16.vlgmr.msra.gmra.mxu1 %vm177_vm0, %v2414_v10  ;;  %2178 = vmatprep.mubr.msk.bf16.mxu0 %vm177_vm0, %v161_v11  ;;  %v2430_v18 = vpack.c.bf16 %v158_v16, %v157_v14  ;;  %v150_v20 = vld [vmem:[%s2404_s20 + $0x28] sm:$0xff]  ;;  %v160_v23 = vld [vmem:[%s2404_s20 + $0x78] sm:$0xff]  ;;  %v151_v25 = vld [vmem:[%s2404_s20 + $0x30] sm:$0xff] }
  0x14   : > { %2195 = vmatpush3.bf16.msra.mxu1 %v2350_v1  ;;  %2179 = vmatmul.mubr.msk.bf16.vlgmr.msra.gmra.mxu0 %vm177_vm0, %v2421_v15  ;;  %v2441_v24 = vpack.c.bf16 %v150_v20, %v149_v19  ;;  %v152_v26 = vld [vmem:[%s2404_s20 + $0x38] sm:$0xff]  ;;  %v316_v27 = vld [vmem:[%s2404_s20 + $0x1] sm:$0xff]  ;;  %v317_v28 = vld [vmem:[%s2404_s20 + $0x9] sm:$0xff]  ;;  %v2453_v31 = vpack.c.bf16 %v160_v23, %v159_v22 }
  0x15   : > { %2190 = vmatprep.mubr.msk.bf16.mxu1 %vm177_vm0, %v2430_v18  ;;  %2213 = vmatpush3.bf16.msra.mxu0 %v2351_v2  ;;  %v518_v29 = vld [vmem:[%s2404_s20 + $0x2] sm:$0xff]  ;;  %v519_v30 = vld [vmem:[%s2404_s20 + $0xa] sm:$0xff]  ;;  %v2455_v32 = vpack.c.bf16 %v152_v26, %v151_v25  ;;  %v332_v33 = vpack.c.bf16 %v317_v28, %v316_v27  ;;  %v319_v36 = vld [vmem:[%s2404_s20 + $0x19] sm:$0xff] }
  0x16   : > { %2182 = vmatprep.mubr.msk.bf16.mxu0 %vm177_vm0, %v2441_v24  ;;  %2230 = vmatprep.subr.bf16.mxu1 %v2352_v17  ;;  %v534_v34 = vpack.c.bf16 %v519_v30, %v518_v29  ;;  %v318_v35 = vld [vmem:[%s2404_s20 + $0x11] sm:$0xff]  ;;  %v521_v38 = vld [vmem:[%s2404_s20 + $0x1a] sm:$0xff]  ;;  %v321_v40 = vld [vmem:[%s2404_s20 + $0x29] sm:$0xff] }
  0x17   : > { %2248 = vmatprep.subr.bf16.mxu0 %v2353_v21  ;;  %v520_v37 = vld [vmem:[%s2404_s20 + $0x12] sm:$0xff]  ;;  %v320_v39 = vld [vmem:[%s2404_s20 + $0x21] sm:$0xff]  ;;  %v333_v41 = vpack.c.bf16 %v319_v36, %v318_v35  ;;  %v523_v43 = vld [vmem:[%s2404_s20 + $0x2a] sm:$0xff] }
  0x18   : > { %v522_v42 = vld [vmem:[%s2404_s20 + $0x22] sm:$0xff]  ;;  %v2471_v44 = vpack.c.bf16 %v521_v38, %v520_v37  ;;  %v2473_v45 = vpack.c.bf16 %v321_v40, %v320_v39  ;;  %v322_v49 = vld [vmem:[%s2404_s20 + $0x31] sm:$0xff]  ;;  %v323_v50 = vld [vmem:[%s2404_s20 + $0x39] sm:$0xff] }
  0x19   : > { %v2475_v46 = vpack.c.bf16 %v523_v43, %v522_v42  ;;  %v524_v51 = vld [vmem:[%s2404_s20 + $0x32] sm:$0xff]  ;;  %v525_v52 = vld [vmem:[%s2404_s20 + $0x3a] sm:$0xff]  ;;  %v325_v54 = vld [vmem:[%s2404_s20 + $0x49] sm:$0xff]  ;;  %v2498_v57 = vpack.c.bf16 %v323_v50, %v322_v49 }
  0x1a   : > { %v324_v53 = vld [vmem:[%s2404_s20 + $0x41] sm:$0xff]  ;;  %v527_v56 = vld [vmem:[%s2404_s20 + $0x4a] sm:$0xff]  ;;  %v2500_v58 = vpack.c.bf16 %v525_v52, %v524_v51  ;;  %v327_v62 = vld [vmem:[%s2404_s20 + $0x59] sm:$0xff] }
  0x1b   : > { %2191 = vmatmul.mubr.msk.bf16.gmra.mxu1 %vm177_vm0, %v2453_v31  ;;  %v526_v55 = vld [vmem:[%s2404_s20 + $0x42] sm:$0xff]  ;;  %v2502_v59 = vpack.c.bf16 %v325_v54, %v324_v53  ;;  %v326_v61 = vld [vmem:[%s2404_s20 + $0x51] sm:$0xff]  ;;  %v529_v0 = vld [vmem:[%s2404_s20 + $0x5a] sm:$0xff] }
  0x1c   : > { %2183 = vmatmul.mubr.msk.bf16.gmra.mxu0 %vm177_vm0, %v2455_v32  ;;  %2196 = vmatprep.mubr.msk.bf16.mxu1 %vm177_vm0, %v332_v33  ;;  %v2504_v60 = vpack.c.bf16 %v527_v56, %v526_v55  ;;  %v528_v63 = vld [vmem:[%s2404_s20 + $0x52] sm:$0xff]  ;;  %v328_v1 = vld [vmem:[%s2404_s20 + $0x61] sm:$0xff]  ;;  %v329_v2 = vld [vmem:[%s2404_s20 + $0x69] sm:$0xff]  ;;  %v2522_v5 = vpack.c.bf16 %v327_v62, %v326_v61 }
  0x1d   : > { %2214 = vmatprep.mubr.msk.bf16.mxu0 %vm177_vm0, %v534_v34  ;;  %v530_v3 = vld [vmem:[%s2404_s20 + $0x62] sm:$0xff]  ;;  %v531_v4 = vld [vmem:[%s2404_s20 + $0x6a] sm:$0xff]  ;;  %v2524_v7 = vpack.c.bf16 %v529_v0, %v528_v63  ;;  %v2526_v8 = vpack.c.bf16 %v329_v2, %v328_v1  ;;  %v331_v12 = vld [vmem:[%s2404_s20 + $0x79] sm:$0xff] }
  0x1e   : > { %v2528_v9 = vpack.c.bf16 %v531_v4, %v530_v3  ;;  %v330_v11 = vld [vmem:[%s2404_s20 + $0x71] sm:$0xff]  ;;  %v533_v14 = vld [vmem:[%s2404_s20 + $0x7a] sm:$0xff]  ;;  %v937_v23 = vld [vmem:[%s2404_s20 + $0x89] sm:$0xff] }
  0x1f   : > { %v532_v13 = vld [vmem:[%s2404_s20 + $0x72] sm:$0xff]  ;;  %v2542_v16 = vpack.c.bf16 %v331_v12, %v330_v11  ;;  %v2357_v20 = vld [vmem:[%s3080_s1 + $0x40] sm:$0xff]  }
  0x20   : > { %v2356_v19 = vld [vmem:[%s3080_s1 + $0x38] sm:$0xff]   ;;  %v936_v22 = vld [vmem:[%s2404_s20 + $0x81] sm:$0xff] }
  0x21   : > { %v945_v26 = vpack.c.bf16 %v937_v23, %v936_v22  ;;  %v1341_v27 = vld [vmem:[%s2404_s20 + $0x98] sm:$0xff] }
  0x22   : > { %v1543_v30 = vld [vmem:[%s2404_s20 + $0x99] sm:$0xff] }
  0x23   : > { %2197 = vmatmul.mubr.msk.bf16.vlgmr.msra.gmra.mxu1 %vm177_vm0, %v333_v41 }
  0x24   : > { %2231 = vmatpush3.bf16.msra.mxu1 %v2352_v17  ;;  %2215 = vmatmul.mubr.msk.bf16.vlgmr.msra.gmra.mxu0 %vm177_vm0, %v2471_v44  ;;  %v2544_v17 = vpack.c.bf16 %v533_v14, %v532_v13 }
  0x25   : > { %2200 = vmatprep.mubr.msk.bf16.mxu1 %vm177_vm0, %v2473_v45  ;;  %2249 = vmatpush3.bf16.msra.mxu0 %v2353_v21  ;;  %v735_v21 = vld [vmem:[%s2404_s20 + $0x88] sm:$0xff] }
  0x26   : > { %2218 = vmatprep.mubr.msk.bf16.mxu0 %vm177_vm0, %v2475_v46  ;;  %2266 = vmatprep.subr.bf16.mxu1 %v2354_v47 }
  0x27   : > { %2284 = vmatprep.subr.bf16.mxu0 %v2355_v48 }
  0x2b   : > { %2201 = vmatmul.mubr.msk.bf16.gmra.mxu1 %vm177_vm0, %v2498_v57 }
  0x2c   : > { %2219 = vmatmul.mubr.msk.bf16.gmra.mxu0 %vm177_vm0, %v2500_v58  ;;  %2204 = vmatprep.mubr.msk.bf16.mxu1 %vm177_vm0, %v2502_v59 }
  0x2d   : > { %2222 = vmatprep.mubr.msk.bf16.mxu0 %vm177_vm0, %v2504_v60 }
  0x33   : > { %2205 = vmatmul.mubr.msk.bf16.gmra.mxu1 %vm177_vm0, %v2522_v5 }
  0x34   : > { %2223 = vmatmul.mubr.msk.bf16.gmra.mxu0 %vm177_vm0, %v2524_v7  ;;  %2208 = vmatprep.mubr.msk.bf16.mxu1 %vm177_vm0, %v2526_v8 }
  0x35   : > { %2226 = vmatprep.mubr.msk.bf16.mxu0 %vm177_vm0, %v2528_v9 }
  0x3b   : > { %2209 = vmatmul.mubr.msk.bf16.gmra.mxu1 %vm177_vm0, %v2542_v16 }
  0x3c   : > { %2227 = vmatmul.mubr.msk.bf16.gmra.mxu0 %vm177_vm0, %v2544_v17  ;;  %2232 = vmatprep.mubr.msk.bf16.mxu1 %vm177_vm0, %v2421_v15  ;;  %v734_v15 = vld [vmem:[%s2404_s20 + $0x80] sm:$0xff] }
  0x3d   : > { %2250 = vmatprep.mubr.msk.bf16.mxu0 %vm177_vm0, %v333_v41  ;;  %v743_v25 = vpack.c.bf16 %v735_v21, %v734_v15 }
  0x43   : > { %2233 = vmatmul.mubr.msk.bf16.vlgmr.msra.gmra.mxu1 %vm177_vm0, %v2441_v24 }
  0x44   : > { %2267 = vmatpush3.bf16.msra.mxu1 %v2354_v47  ;;  %2251 = vmatmul.mubr.msk.bf16.vlgmr.msra.gmra.mxu0 %vm177_vm0, %v2473_v45 }
  0x45   : > { %2236 = vmatprep.mubr.msk.bf16.mxu1 %vm177_vm0, %v2455_v32  ;;  %2285 = vmatpush3.bf16.msra.mxu0 %v2355_v48 }
  0x46   : > { %2254 = vmatprep.mubr.msk.bf16.mxu0 %vm177_vm0, %v2498_v57  ;;  %2302 = vmatprep.subr.bf16.mxu1 %v2356_v19 }
  0x47   : > { %2320 = vmatprep.subr.bf16.mxu0 %v2357_v20 }
  0x4b   : > { %2237 = vmatmul.mubr.msk.bf16.gmra.mxu1 %vm177_vm0, %v2409_v6 }
  0x4c   : > { %2255 = vmatmul.mubr.msk.bf16.gmra.mxu0 %vm177_vm0, %v2502_v59  ;;  %2240 = vmatprep.mubr.msk.bf16.mxu1 %vm177_vm0, %v2414_v10 }
  0x4d   : > { %2258 = vmatprep.mubr.msk.bf16.mxu0 %vm177_vm0, %v2522_v5 }
  0x53   : > { %2241 = vmatmul.mubr.msk.bf16.gmra.mxu1 %vm177_vm0, %v2430_v18 }
  0x54   : > { %2259 = vmatmul.mubr.msk.bf16.gmra.mxu0 %vm177_vm0, %v2526_v8  ;;  %2244 = vmatprep.mubr.msk.bf16.mxu1 %vm177_vm0, %v2453_v31 }
  0x55   : > { %2262 = vmatprep.mubr.msk.bf16.mxu0 %vm177_vm0, %v2542_v16 }
  0x5b   : > { %2245 = vmatmul.mubr.msk.bf16.gmra.mxu1 %vm177_vm0, %v743_v25 }
  0x5c   : > { %2263 = vmatmul.mubr.msk.bf16.gmra.mxu0 %vm177_vm0, %v945_v26  ;;  %2268 = vmatprep.mubr.msk.bf16.mxu1 %vm177_vm0, %v2471_v44 }
  0x5d   : > { %2286 = vmatprep.mubr.msk.bf16.mxu0 %vm177_vm0, %v2441_v24  ;;  %v1139_v24 = vld [vmem:[%s2404_s20 + $0x8a] sm:$0xff] }
  0x63   : > { %2269 = vmatmul.mubr.msk.bf16.vlgmr.msra.gmra.mxu1 %vm177_vm0, %v2475_v46 }
  0x64   : > { %2303 = vmatpush3.bf16.msra.mxu1 %v2356_v19  ;;  %2287 = vmatmul.mubr.msk.bf16.vlgmr.msra.gmra.mxu0 %vm177_vm0, %v2455_v32  ;;  %v1745_v32 = vld [vmem:[%s2404_s20 + $0x9a] sm:$0xff] }
  0x65   : > { %2272 = vmatprep.mubr.msk.bf16.mxu1 %vm177_vm0, %v2500_v58  ;;  %2321 = vmatpush3.bf16.msra.mxu0 %v2357_v20 }
  0x66   : > { %2290 = vmatprep.mubr.msk.bf16.mxu0 %vm177_vm0, %v2409_v6  ;;  %v1138_v6 = vld [vmem:[%s2404_s20 + $0x82] sm:$0xff] }
  0x67   : > { %v1147_v28 = vpack.c.bf16 %v1139_v24, %v1138_v6 }
  0x6b   : > { %2273 = vmatmul.mubr.msk.bf16.gmra.mxu1 %vm177_vm0, %v2504_v60 }
  0x6c   : > { %2291 = vmatmul.mubr.msk.bf16.gmra.mxu0 %vm177_vm0, %v2414_v10  ;;  %2276 = vmatprep.mubr.msk.bf16.mxu1 %vm177_vm0, %v2524_v7  ;;  %v1340_v10 = vld [vmem:[%s2404_s20 + $0x90] sm:$0xff] }
  0x6d   : > { %2294 = vmatprep.mubr.msk.bf16.mxu0 %vm177_vm0, %v2430_v18  ;;  %v1349_v29 = vpack.c.bf16 %v1341_v27, %v1340_v10  ;;  %v1542_v18 = vld [vmem:[%s2404_s20 + $0x91] sm:$0xff] }
  0x6e   : > { %v1551_v33 = vpack.c.bf16 %v1543_v30, %v1542_v18 }
  0x73   : > { %2277 = vmatmul.mubr.msk.bf16.gmra.mxu1 %vm177_vm0, %v2528_v9 }
  0x74   : > { %2295 = vmatmul.mubr.msk.bf16.gmra.mxu0 %vm177_vm0, %v2453_v31  ;;  %2280 = vmatprep.mubr.msk.bf16.mxu1 %vm177_vm0, %v2544_v17  ;;  %v1744_v31 = vld [vmem:[%s2404_s20 + $0x92] sm:$0xff] }
  0x75   : > { %2298 = vmatprep.mubr.msk.bf16.mxu0 %vm177_vm0, %v743_v25  ;;  %v1753_v34 = vpack.c.bf16 %v1745_v32, %v1744_v31 }
  0x7b   : > { %2281 = vmatmul.mubr.msk.bf16.gmra.mxu1 %vm177_vm0, %v1147_v28 }
  0x7c   : > { %2299 = vmatmul.mubr.msk.bf16.gmra.mxu0 %vm177_vm0, %v1349_v29  ;;  %2304 = vmatprep.mubr.msk.bf16.mxu1 %vm177_vm0, %v2473_v45 }
  0x7d   : > { %2322 = vmatprep.mubr.msk.bf16.mxu0 %vm177_vm0, %v2475_v46 }
  0x83   : > { %2305 = vmatmul.mubr.msk.bf16.vlgmr.msra.gmra.mxu1 %vm177_vm0, %v2498_v57 }
  0x84   : > { %2323 = vmatmul.mubr.msk.bf16.vlgmr.msra.gmra.mxu0 %vm177_vm0, %v2500_v58  ;;  %2308 = vmatprep.mubr.msk.bf16.mxu1 %vm177_vm0, %v2502_v59 }
  0x85   : > { %2326 = vmatprep.mubr.msk.bf16.mxu0 %vm177_vm0, %v2504_v60 }
  0x8b   : > { %2309 = vmatmul.mubr.msk.bf16.gmra.mxu1 %vm177_vm0, %v2522_v5 }
  0x8c   : > { %2327 = vmatmul.mubr.msk.bf16.gmra.mxu0 %vm177_vm0, %v2524_v7  ;;  %2312 = vmatprep.mubr.msk.bf16.mxu1 %vm177_vm0, %v2526_v8 }
  0x8d   : > { %2330 = vmatprep.mubr.msk.bf16.mxu0 %vm177_vm0, %v2528_v9 }
  0x93   : > { %2313 = vmatmul.mubr.msk.bf16.gmra.mxu1 %vm177_vm0, %v2542_v16 }
  0x94   : > { %2331 = vmatmul.mubr.msk.bf16.gmra.mxu0 %vm177_vm0, %v2544_v17  ;;  %2316 = vmatprep.mubr.msk.bf16.mxu1 %vm177_vm0, %v945_v26 }
  0x95   : > { %2334 = vmatprep.mubr.msk.bf16.mxu0 %vm177_vm0, %v1147_v28 }
  0x9b   : > { %2317 = vmatmul.mubr.msk.bf16.gmra.mxu1 %vm177_vm0, %v1551_v33 }
  0x9c   : > { %2335 = vmatmul.mubr.msk.bf16.gmra.mxu0 %vm177_vm0, %v1753_v34 }
  0xd3   : > { %v2188_v35 = vpop.f32.mrf.mxu1 }
  0xd4   : > { %310 = vst.msk [vmem:[%s2658_s8 + $0x50] sm:$0xff] %vm299_vm1, %v2188_v35  ;;  %v2180_v36 = vpop.f32.mrf.mxu0 }
  0xd5   : > { %v268_v37 = vpop.f32.mrf.mxu1  ;;  %302 = vst.msk [vmem:[%s2658_s8 + $0x10] sm:$0xff] %vm299_vm1, %v2180_v36 }
  0xd6   : > { %308 = vst.msk [vmem:[%s2658_s8 + $0x40] sm:$0xff] %vm299_vm1, %v268_v37  ;;  %v236_v38 = vpop.f32.mrf.mxu0 }
  0xd7   : > { %v2189_v39 = vpop.f32.mrf.mxu1  ;;  %300 = vst.msk [vmem:[%s2658_s8] sm:$0xff] %vm299_vm1, %v236_v38 }
  0xd8   : > { %311 = vst.msk [vmem:[%s2658_s8 + $0x58] sm:$0xff] %vm299_vm1, %v2189_v39  ;;  %v2181_v40 = vpop.f32.mrf.mxu0 }
  0xd9   : > { %v271_v41 = vpop.f32.mrf.mxu1  ;;  %303 = vst.msk [vmem:[%s2658_s8 + $0x18] sm:$0xff] %vm299_vm1, %v2181_v40 }
  0xda   : > { %309 = vst.msk [vmem:[%s2658_s8 + $0x48] sm:$0xff] %vm299_vm1, %v271_v41  ;;  %v239_v42 = vpop.f32.mrf.mxu0 }
  0xdb   : > { %v2192_v43 = vpop.f32.mrf.mxu1  ;;  %301 = vst.msk [vmem:[%s2658_s8 + $0x8] sm:$0xff] %vm299_vm1, %v239_v42  ;;  %v480_v28 = vld [vmem:[%s2658_s8 + $0x50] sm:$0xff] }
  0xdc   : > { %314 = vst.msk [vmem:[%s2658_s8 + $0x70] sm:$0xff] %vm299_vm1, %v2192_v43  ;;  %v2184_v44 = vpop.f32.mrf.mxu0  ;;  %v472_v50 = vld [vmem:[%s2658_s8 + $0x10] sm:$0xff] }
  0xdd   : > { %v284_v45 = vpop.f32.mrf.mxu1  ;;  %306 = vst.msk [vmem:[%s2658_s8 + $0x30] sm:$0xff] %vm299_vm1, %v2184_v44  ;;  %v478_v33 = vld [vmem:[%s2658_s8 + $0x40] sm:$0xff] }
  0xde   : > { %312 = vst.msk [vmem:[%s2658_s8 + $0x60] sm:$0xff] %vm299_vm1, %v284_v45  ;;  %v252_v46 = vpop.f32.mrf.mxu0  ;;  %v470_v53 = vld [vmem:[%s2658_s8] sm:$0xff] }
  0xdf   : > { %v2193_v47 = vpop.f32.mrf.mxu1  ;;  %304 = vst.msk [vmem:[%s2658_s8 + $0x20] sm:$0xff] %vm299_vm1, %v252_v46  ;;  %v481_v39 = vld [vmem:[%s2658_s8 + $0x58] sm:$0xff] }
  0xe0   : > { %315 = vst.msk [vmem:[%s2658_s8 + $0x78] sm:$0xff] %vm299_vm1, %v2193_v47  ;;  %v2185_v48 = vpop.f32.mrf.mxu0  ;;  %v473_v60 = vld [vmem:[%s2658_s8 + $0x18] sm:$0xff] }
  0xe1   : > { %v287_v49 = vpop.f32.mrf.mxu1  ;;  %307 = vst.msk [vmem:[%s2658_s8 + $0x38] sm:$0xff] %vm299_vm1, %v2185_v48  ;;  %v479_v45 = vld [vmem:[%s2658_s8 + $0x48] sm:$0xff] }
  0xe2   : > { %313 = vst.msk [vmem:[%s2658_s8 + $0x68] sm:$0xff] %vm299_vm1, %v287_v49  ;;  %v255_v51 = vpop.f32.mrf.mxu0  ;;  %v471_v0 = vld [vmem:[%s2658_s8 + $0x8] sm:$0xff] }
  0xe3   : > { %v2198_v52 = vpop.f32.mrf.mxu1  ;;  %305 = vst.msk [vmem:[%s2658_s8 + $0x28] sm:$0xff] %vm299_vm1, %v255_v51  ;;  %v484_v51 = vld [vmem:[%s2658_s8 + $0x70] sm:$0xff] }
  0xe4   : > { %v488_v54 = vadd.f32 %v2198_v52, %v472_v50  ;;  %v2216_v55 = vpop.f32.mrf.mxu0  ;;  %v476_v1 = vld [vmem:[%s2658_s8 + $0x30] sm:$0xff] }
  0xe5   : > { %v407_v56 = vpop.f32.mrf.mxu1 }
  0xe6   : > { %504 = vst.msk [vmem:[%s2658_s8 + $0x10] sm:$0xff] %vm299_vm1, %v488_v54  ;;  %v486_v57 = vadd.f32 %v470_v53, %v407_v56  ;;  %v609_v58 = vpop.f32.mrf.mxu0  ;;  %v474_v5 = vld [vmem:[%s2658_s8 + $0x20] sm:$0xff] }
  0xe7   : > { %v2199_v59 = vpop.f32.mrf.mxu1 }
  0xe8   : > { %502 = vst.msk [vmem:[%s2658_s8] sm:$0xff] %vm299_vm1, %v486_v57  ;;  %v489_v61 = vadd.f32 %v2199_v59, %v473_v60  ;;  %v2217_v62 = vpop.f32.mrf.mxu0  ;;  %v477_v19 = vld [vmem:[%s2658_s8 + $0x38] sm:$0xff]  ;;  %v482_v57 = vld [vmem:[%s2658_s8 + $0x60] sm:$0xff] }
  0xe9   : > { %v410_v63 = vpop.f32.mrf.mxu1 }
  0xea   : > { %505 = vst.msk [vmem:[%s2658_s8 + $0x18] sm:$0xff] %vm299_vm1, %v489_v61  ;;  %v487_v2 = vadd.f32 %v471_v0, %v410_v63  ;;  %v612_v3 = vpop.f32.mrf.mxu0  ;;  %v475_v25 = vld [vmem:[%s2658_s8 + $0x28] sm:$0xff]  ;;  %v485_v63 = vld [vmem:[%s2658_s8 + $0x78] sm:$0xff] }
  0xeb   : > { %v2202_v4 = vpop.f32.mrf.mxu1 }
  0xec   : > { %503 = vst.msk [vmem:[%s2658_s8 + $0x8] sm:$0xff] %vm299_vm1, %v487_v2  ;;  %v492_v7 = vadd.f32 %v2202_v4, %v476_v1  ;;  %v2220_v8 = vpop.f32.mrf.mxu0 }
  0xed   : > { %v674_v9 = vld [vmem:[%s2658_s8 + $0x10] sm:$0xff]  ;;  %v423_v11 = vpop.f32.mrf.mxu1 }
  0xee   : > { %v690_v12 = vadd.f32 %v2216_v55, %v674_v9  ;;  %508 = vst.msk [vmem:[%s2658_s8 + $0x30] sm:$0xff] %vm299_vm1, %v492_v7  ;;  %v490_v13 = vadd.f32 %v474_v5, %v423_v11  ;;  %v625_v14 = vpop.f32.mrf.mxu0  ;;  %v483_v5 = vld [vmem:[%s2658_s8 + $0x68] sm:$0xff] }
  0xef   : > { %v672_v16 = vld [vmem:[%s2658_s8] sm:$0xff]  ;;  %v2203_v17 = vpop.f32.mrf.mxu1 }
  0xf0   : > { %706 = vst.msk [vmem:[%s2658_s8 + $0x10] sm:$0xff] %vm299_vm1, %v690_v12  ;;  %v688_v20 = vadd.f32 %v672_v16, %v609_v58  ;;  %506 = vst.msk [vmem:[%s2658_s8 + $0x20] sm:$0xff] %vm299_vm1, %v490_v13  ;;  %v493_v15 = vadd.f32 %v2203_v17, %v477_v19  ;;  %v2221_v21 = vpop.f32.mrf.mxu0 }
  0xf1   : > { %v675_v22 = vld [vmem:[%s2658_s8 + $0x18] sm:$0xff]  ;;  %v426_v23 = vpop.f32.mrf.mxu1 }
  0xf2   : > { %704 = vst.msk [vmem:[%s2658_s8] sm:$0xff] %vm299_vm1, %v688_v20  ;;  %v691_v26 = vadd.f32 %v2217_v62, %v675_v22  ;;  %509 = vst.msk [vmem:[%s2658_s8 + $0x38] sm:$0xff] %vm299_vm1, %v493_v15  ;;  %v491_v6 = vadd.f32 %v475_v25, %v426_v23  ;;  %v628_v24 = vpop.f32.mrf.mxu0 }
  0xf3   : > { %v673_v10 = vld [vmem:[%s2658_s8 + $0x8] sm:$0xff]  ;;  %v2206_v27 = vpop.f32.mrf.mxu1 }
  0xf4   : > { %707 = vst.msk [vmem:[%s2658_s8 + $0x18] sm:$0xff] %vm299_vm1, %v691_v26  ;;  %v689_v29 = vadd.f32 %v673_v10, %v612_v3  ;;  %507 = vst.msk [vmem:[%s2658_s8 + $0x28] sm:$0xff] %vm299_vm1, %v491_v6  ;;  %v496_v18 = vadd.f32 %v2206_v27, %v480_v28  ;;  %v2224_v30 = vpop.f32.mrf.mxu0 }
  0xf5   : > { %v678_v31 = vld [vmem:[%s2658_s8 + $0x30] sm:$0xff]  ;;  %v439_v32 = vpop.f32.mrf.mxu1 }
  0xf6   : > { %705 = vst.msk [vmem:[%s2658_s8 + $0x8] sm:$0xff] %vm299_vm1, %v689_v29  ;;  %v694_v34 = vadd.f32 %v2220_v8, %v678_v31  ;;  %512 = vst.msk [vmem:[%s2658_s8 + $0x50] sm:$0xff] %vm299_vm1, %v496_v18  ;;  %v494_v35 = vadd.f32 %v478_v33, %v439_v32  ;;  %v641_v36 = vpop.f32.mrf.mxu0 }
  0xf7   : > { %v676_v37 = vld [vmem:[%s2658_s8 + $0x20] sm:$0xff]  ;;  %v2207_v38 = vpop.f32.mrf.mxu1  ;;  %v876_v13 = vld [vmem:[%s2658_s8 + $0x10] sm:$0xff] }
  0xf8   : > { %710 = vst.msk [vmem:[%s2658_s8 + $0x30] sm:$0xff] %vm299_vm1, %v694_v34  ;;  %v692_v40 = vadd.f32 %v676_v37, %v625_v14  ;;  %510 = vst.msk [vmem:[%s2658_s8 + $0x40] sm:$0xff] %vm299_vm1, %v494_v35  ;;  %v497_v41 = vadd.f32 %v2207_v38, %v481_v39  ;;  %v2225_v42 = vpop.f32.mrf.mxu0 }
  0xf9   : > { %v679_v43 = vld [vmem:[%s2658_s8 + $0x38] sm:$0xff]  ;;  %v442_v44 = vpop.f32.mrf.mxu1  ;;  %v874_v15 = vld [vmem:[%s2658_s8] sm:$0xff] }
  0xfa   : > { %708 = vst.msk [vmem:[%s2658_s8 + $0x20] sm:$0xff] %vm299_vm1, %v692_v40  ;;  %v695_v46 = vadd.f32 %v2221_v21, %v679_v43  ;;  %513 = vst.msk [vmem:[%s2658_s8 + $0x58] sm:$0xff] %vm299_vm1, %v497_v41  ;;  %v495_v47 = vadd.f32 %v479_v45, %v442_v44  ;;  %v644_v48 = vpop.f32.mrf.mxu0 }
  0xfb   : > { %v677_v49 = vld [vmem:[%s2658_s8 + $0x28] sm:$0xff]  ;;  %v2210_v50 = vpop.f32.mrf.mxu1  ;;  %v877_v6 = vld [vmem:[%s2658_s8 + $0x18] sm:$0xff] }
  0xfc   : > { %711 = vst.msk [vmem:[%s2658_s8 + $0x38] sm:$0xff] %vm299_vm1, %v695_v46  ;;  %v693_v52 = vadd.f32 %v677_v49, %v628_v24  ;;  %511 = vst.msk [vmem:[%s2658_s8 + $0x48] sm:$0xff] %vm299_vm1, %v495_v47  ;;  %v500_v53 = vadd.f32 %v2210_v50, %v484_v51  ;;  %v2228_v54 = vpop.f32.mrf.mxu0 }
  0xfd   : > { %v682_v55 = vld [vmem:[%s2658_s8 + $0x50] sm:$0xff]  ;;  %v455_v56 = vpop.f32.mrf.mxu1  ;;  %v875_v18 = vld [vmem:[%s2658_s8 + $0x8] sm:$0xff] }
  0xfe   : > { %709 = vst.msk [vmem:[%s2658_s8 + $0x28] sm:$0xff] %vm299_vm1, %v693_v52  ;;  %v698_v58 = vadd.f32 %v2224_v30, %v682_v55  ;;  %516 = vst.msk [vmem:[%s2658_s8 + $0x70] sm:$0xff] %vm299_vm1, %v500_v53  ;;  %v498_v59 = vadd.f32 %v482_v57, %v455_v56  ;;  %v657_v60 = vpop.f32.mrf.mxu0 }
  0xff   : > { %v680_v61 = vld [vmem:[%s2658_s8 + $0x40] sm:$0xff]  ;;  %v2211_v62 = vpop.f32.mrf.mxu1  ;;  %v880_v35 = vld [vmem:[%s2658_s8 + $0x30] sm:$0xff] }
 0x100   : > { %714 = vst.msk [vmem:[%s2658_s8 + $0x50] sm:$0xff] %vm299_vm1, %v698_v58  ;;  %v696_v0 = vadd.f32 %v680_v61, %v641_v36  ;;  %514 = vst.msk [vmem:[%s2658_s8 + $0x60] sm:$0xff] %vm299_vm1, %v498_v59  ;;  %v501_v1 = vadd.f32 %v2211_v62, %v485_v63  ;;  %v2229_v2 = vpop.f32.mrf.mxu0 }
 0x101   : > { %v683_v3 = vld [vmem:[%s2658_s8 + $0x58] sm:$0xff]  ;;  %v458_v4 = vpop.f32.mrf.mxu1  ;;  %v878_v41 = vld [vmem:[%s2658_s8 + $0x20] sm:$0xff] }
 0x102   : > { %712 = vst.msk [vmem:[%s2658_s8 + $0x40] sm:$0xff] %vm299_vm1, %v696_v0  ;;  %v699_v7 = vadd.f32 %v2225_v42, %v683_v3  ;;  %517 = vst.msk [vmem:[%s2658_s8 + $0x78] sm:$0xff] %vm299_vm1, %v501_v1  ;;  %v499_v8 = vadd.f32 %v483_v5, %v458_v4  ;;  %v660_v9 = vpop.f32.mrf.mxu0 }
 0x103   : > { %v681_v11 = vld [vmem:[%s2658_s8 + $0x48] sm:$0xff]  ;;  %v2234_v12 = vpop.f32.mrf.mxu1  ;;  %v881_v47 = vld [vmem:[%s2658_s8 + $0x38] sm:$0xff] }
 0x104   : > { %715 = vst.msk [vmem:[%s2658_s8 + $0x58] sm:$0xff] %vm299_vm1, %v699_v7  ;;  %v697_v14 = vadd.f32 %v681_v11, %v644_v48  ;;  %515 = vst.msk [vmem:[%s2658_s8 + $0x68] sm:$0xff] %vm299_vm1, %v499_v8  ;;  %v892_v16 = vadd.f32 %v2234_v12, %v876_v13  ;;  %v2252_v17 = vpop.f32.mrf.mxu0 }
 0x105   : > { %v686_v19 = vld [vmem:[%s2658_s8 + $0x70] sm:$0xff]  ;;  %v811_v20 = vpop.f32.mrf.mxu1  ;;  %v879_v53 = vld [vmem:[%s2658_s8 + $0x28] sm:$0xff] }
 0x106   : > { %713 = vst.msk [vmem:[%s2658_s8 + $0x48] sm:$0xff] %vm299_vm1, %v697_v14  ;;  %v702_v21 = vadd.f32 %v2228_v54, %v686_v19  ;;  %908 = vst.msk [vmem:[%s2658_s8 + $0x10] sm:$0xff] %vm299_vm1, %v892_v16  ;;  %v890_v22 = vadd.f32 %v874_v15, %v811_v20  ;;  %v1013_v23 = vpop.f32.mrf.mxu0 }
 0x107   : > { %v684_v25 = vld [vmem:[%s2658_s8 + $0x60] sm:$0xff]  ;;  %v2235_v26 = vpop.f32.mrf.mxu1  ;;  %v884_v59 = vld [vmem:[%s2658_s8 + $0x50] sm:$0xff] }
 0x108   : > { %718 = vst.msk [vmem:[%s2658_s8 + $0x70] sm:$0xff] %vm299_vm1, %v702_v21  ;;  %v700_v24 = vadd.f32 %v684_v25, %v657_v60  ;;  %906 = vst.msk [vmem:[%s2658_s8] sm:$0xff] %vm299_vm1, %v890_v22  ;;  %v893_v10 = vadd.f32 %v2235_v26, %v877_v6  ;;  %v2253_v27 = vpop.f32.mrf.mxu0 }
 0x109   : > { %v687_v28 = vld [vmem:[%s2658_s8 + $0x78] sm:$0xff]  ;;  %v814_v29 = vpop.f32.mrf.mxu1  ;;  %v882_v1 = vld [vmem:[%s2658_s8 + $0x40] sm:$0xff] }
 0x10a   : > { %716 = vst.msk [vmem:[%s2658_s8 + $0x60] sm:$0xff] %vm299_vm1, %v700_v24  ;;  %v703_v30 = vadd.f32 %v2229_v2, %v687_v28  ;;  %909 = vst.msk [vmem:[%s2658_s8 + $0x18] sm:$0xff] %vm299_vm1, %v893_v10  ;;  %v891_v31 = vadd.f32 %v875_v18, %v814_v29  ;;  %v1016_v32 = vpop.f32.mrf.mxu0 }
 0x10b   : > { %v685_v33 = vld [vmem:[%s2658_s8 + $0x68] sm:$0xff]  ;;  %v2238_v34 = vpop.f32.mrf.mxu1  ;;  %v885_v8 = vld [vmem:[%s2658_s8 + $0x58] sm:$0xff] }
 0x10c   : > { %719 = vst.msk [vmem:[%s2658_s8 + $0x78] sm:$0xff] %vm299_vm1, %v703_v30  ;;  %v701_v36 = vadd.f32 %v685_v33, %v660_v9  ;;  %907 = vst.msk [vmem:[%s2658_s8 + $0x8] sm:$0xff] %vm299_vm1, %v891_v31  ;;  %v896_v37 = vadd.f32 %v2238_v34, %v880_v35  ;;  %v2256_v38 = vpop.f32.mrf.mxu0 }
 0x10d   : > { %v1078_v39 = vld [vmem:[%s2658_s8 + $0x10] sm:$0xff]  ;;  %v827_v40 = vpop.f32.mrf.mxu1  ;;  %v883_v16 = vld [vmem:[%s2658_s8 + $0x48] sm:$0xff] }
 0x10e   : > { %717 = vst.msk [vmem:[%s2658_s8 + $0x68] sm:$0xff] %vm299_vm1, %v701_v36  ;;  %v1094_v42 = vadd.f32 %v2252_v17, %v1078_v39  ;;  %912 = vst.msk [vmem:[%s2658_s8 + $0x30] sm:$0xff] %vm299_vm1, %v896_v37  ;;  %v894_v43 = vadd.f32 %v878_v41, %v827_v40  ;;  %v1029_v44 = vpop.f32.mrf.mxu0 }
 0x10f   : > { %v1076_v45 = vld [vmem:[%s2658_s8] sm:$0xff]  ;;  %v2239_v46 = vpop.f32.mrf.mxu1  ;;  %v888_v22 = vld [vmem:[%s2658_s8 + $0x70] sm:$0xff] }
 0x110   : > { %1110 = vst.msk [vmem:[%s2658_s8 + $0x10] sm:$0xff] %vm299_vm1, %v1094_v42  ;;  %v1092_v48 = vadd.f32 %v1076_v45, %v1013_v23  ;;  %910 = vst.msk [vmem:[%s2658_s8 + $0x20] sm:$0xff] %vm299_vm1, %v894_v43  ;;  %v897_v49 = vadd.f32 %v2239_v46, %v881_v47  ;;  %v2257_v50 = vpop.f32.mrf.mxu0 }
 0x111   : > { %v1079_v51 = vld [vmem:[%s2658_s8 + $0x18] sm:$0xff]  ;;  %v830_v52 = vpop.f32.mrf.mxu1  ;;  %v886_v10 = vld [vmem:[%s2658_s8 + $0x60] sm:$0xff] }
 0x112   : > { %1108 = vst.msk [vmem:[%s2658_s8] sm:$0xff] %vm299_vm1, %v1092_v48  ;;  %v1095_v54 = vadd.f32 %v2253_v27, %v1079_v51  ;;  %913 = vst.msk [vmem:[%s2658_s8 + $0x38] sm:$0xff] %vm299_vm1, %v897_v49  ;;  %v895_v55 = vadd.f32 %v879_v53, %v830_v52  ;;  %v1032_v56 = vpop.f32.mrf.mxu0 }
 0x113   : > { %v1077_v57 = vld [vmem:[%s2658_s8 + $0x8] sm:$0xff]  ;;  %v2242_v58 = vpop.f32.mrf.mxu1  ;;  %v889_v31 = vld [vmem:[%s2658_s8 + $0x78] sm:$0xff] }
 0x114   : > { %1111 = vst.msk [vmem:[%s2658_s8 + $0x18] sm:$0xff] %vm299_vm1, %v1095_v54  ;;  %v1093_v60 = vadd.f32 %v1077_v57, %v1016_v32  ;;  %911 = vst.msk [vmem:[%s2658_s8 + $0x28] sm:$0xff] %vm299_vm1, %v895_v55  ;;  %v900_v61 = vadd.f32 %v2242_v58, %v884_v59  ;;  %v2260_v62 = vpop.f32.mrf.mxu0 }
 0x115   : > { %v1082_v63 = vld [vmem:[%s2658_s8 + $0x30] sm:$0xff]  ;;  %v843_v0 = vpop.f32.mrf.mxu1  ;;  %v887_v37 = vld [vmem:[%s2658_s8 + $0x68] sm:$0xff] }
 0x116   : > { %1109 = vst.msk [vmem:[%s2658_s8 + $0x8] sm:$0xff] %vm299_vm1, %v1093_v60  ;;  %v1098_v2 = vadd.f32 %v2256_v38, %v1082_v63  ;;  %916 = vst.msk [vmem:[%s2658_s8 + $0x50] sm:$0xff] %vm299_vm1, %v900_v61  ;;  %v898_v3 = vadd.f32 %v882_v1, %v843_v0  ;;  %v1045_v4 = vpop.f32.mrf.mxu0 }
 0x117   : > { %v1080_v5 = vld [vmem:[%s2658_s8 + $0x20] sm:$0xff]  ;;  %v2243_v7 = vpop.f32.mrf.mxu1  ;;  %v1280_v43 = vld [vmem:[%s2658_s8 + $0x10] sm:$0xff] }
 0x118   : > { %1114 = vst.msk [vmem:[%s2658_s8 + $0x30] sm:$0xff] %vm299_vm1, %v1098_v2  ;;  %v1096_v9 = vadd.f32 %v1080_v5, %v1029_v44  ;;  %914 = vst.msk [vmem:[%s2658_s8 + $0x40] sm:$0xff] %vm299_vm1, %v898_v3  ;;  %v901_v11 = vadd.f32 %v2243_v7, %v885_v8  ;;  %v2261_v12 = vpop.f32.mrf.mxu0 }
 0x119   : > { %v1083_v13 = vld [vmem:[%s2658_s8 + $0x38] sm:$0xff]  ;;  %v846_v14 = vpop.f32.mrf.mxu1  ;;  %v1278_v49 = vld [vmem:[%s2658_s8] sm:$0xff] }
 0x11a   : > { %1112 = vst.msk [vmem:[%s2658_s8 + $0x20] sm:$0xff] %vm299_vm1, %v1096_v9  ;;  %v1099_v17 = vadd.f32 %v2257_v50, %v1083_v13  ;;  %917 = vst.msk [vmem:[%s2658_s8 + $0x58] sm:$0xff] %vm299_vm1, %v901_v11  ;;  %v899_v19 = vadd.f32 %v883_v16, %v846_v14  ;;  %v1048_v20 = vpop.f32.mrf.mxu0 }
 0x11b   : > { %v1081_v15 = vld [vmem:[%s2658_s8 + $0x28] sm:$0xff]  ;;  %v2246_v21 = vpop.f32.mrf.mxu1  ;;  %v1281_v55 = vld [vmem:[%s2658_s8 + $0x18] sm:$0xff] }
 0x11c   : > { %1115 = vst.msk [vmem:[%s2658_s8 + $0x38] sm:$0xff] %vm299_vm1, %v1099_v17  ;;  %v1097_v23 = vadd.f32 %v1081_v15, %v1032_v56  ;;  %915 = vst.msk [vmem:[%s2658_s8 + $0x48] sm:$0xff] %vm299_vm1, %v899_v19  ;;  %v904_v25 = vadd.f32 %v2246_v21, %v888_v22  ;;  %v2264_v26 = vpop.f32.mrf.mxu0 }
 0x11d   : > { %v1086_v6 = vld [vmem:[%s2658_s8 + $0x50] sm:$0xff]  ;;  %v859_v24 = vpop.f32.mrf.mxu1  ;;  %v1279_v61 = vld [vmem:[%s2658_s8 + $0x8] sm:$0xff] }
 0x11e   : > { %1113 = vst.msk [vmem:[%s2658_s8 + $0x28] sm:$0xff] %vm299_vm1, %v1097_v23  ;;  %v1102_v27 = vadd.f32 %v2260_v62, %v1086_v6  ;;  %920 = vst.msk [vmem:[%s2658_s8 + $0x70] sm:$0xff] %vm299_vm1, %v904_v25  ;;  %v902_v28 = vadd.f32 %v886_v10, %v859_v24  ;;  %v1061_v29 = vpop.f32.mrf.mxu0 }
 0x11f   : > { %v1084_v18 = vld [vmem:[%s2658_s8 + $0x40] sm:$0xff]  ;;  %v2247_v30 = vpop.f32.mrf.mxu1  ;;  %v1284_v3 = vld [vmem:[%s2658_s8 + $0x30] sm:$0xff] }
 0x120   : > { %1118 = vst.msk [vmem:[%s2658_s8 + $0x50] sm:$0xff] %vm299_vm1, %v1102_v27  ;;  %v1100_v32 = vadd.f32 %v1084_v18, %v1045_v4  ;;  %918 = vst.msk [vmem:[%s2658_s8 + $0x60] sm:$0xff] %vm299_vm1, %v902_v28  ;;  %v905_v33 = vadd.f32 %v2247_v30, %v889_v31  ;;  %v2265_v34 = vpop.f32.mrf.mxu0 }
 0x121   : > { %v1087_v35 = vld [vmem:[%s2658_s8 + $0x58] sm:$0xff]  ;;  %v862_v36 = vpop.f32.mrf.mxu1  ;;  %v1282_v11 = vld [vmem:[%s2658_s8 + $0x20] sm:$0xff] }
 0x122   : > { %1116 = vst.msk [vmem:[%s2658_s8 + $0x40] sm:$0xff] %vm299_vm1, %v1100_v32  ;;  %v1103_v38 = vadd.f32 %v2261_v12, %v1087_v35  ;;  %921 = vst.msk [vmem:[%s2658_s8 + $0x78] sm:$0xff] %vm299_vm1, %v905_v33  ;;  %v903_v39 = vadd.f32 %v887_v37, %v862_v36  ;;  %v1064_v40 = vpop.f32.mrf.mxu0 }
 0x123   : > { %v1085_v41 = vld [vmem:[%s2658_s8 + $0x48] sm:$0xff]  ;;  %v2270_v42 = vpop.f32.mrf.mxu1  ;;  %v1285_v19 = vld [vmem:[%s2658_s8 + $0x38] sm:$0xff] }
 0x124   : > { %1119 = vst.msk [vmem:[%s2658_s8 + $0x58] sm:$0xff] %vm299_vm1, %v1103_v38  ;;  %v1101_v44 = vadd.f32 %v1085_v41, %v1048_v20  ;;  %919 = vst.msk [vmem:[%s2658_s8 + $0x68] sm:$0xff] %vm299_vm1, %v903_v39  ;;  %v1296_v45 = vadd.f32 %v2270_v42, %v1280_v43  ;;  %v2288_v46 = vpop.f32.mrf.mxu0 }
 0x125   : > { %v1090_v47 = vld [vmem:[%s2658_s8 + $0x70] sm:$0xff]  ;;  %v1215_v48 = vpop.f32.mrf.mxu1  ;;  %v1283_v25 = vld [vmem:[%s2658_s8 + $0x28] sm:$0xff] }
 0x126   : > { %1117 = vst.msk [vmem:[%s2658_s8 + $0x48] sm:$0xff] %vm299_vm1, %v1101_v44  ;;  %v1106_v50 = vadd.f32 %v2264_v26, %v1090_v47  ;;  %1312 = vst.msk [vmem:[%s2658_s8 + $0x10] sm:$0xff] %vm299_vm1, %v1296_v45  ;;  %v1294_v51 = vadd.f32 %v1278_v49, %v1215_v48  ;;  %v1417_v52 = vpop.f32.mrf.mxu0 }
 0x127   : > { %v1088_v53 = vld [vmem:[%s2658_s8 + $0x60] sm:$0xff]  ;;  %v2271_v54 = vpop.f32.mrf.mxu1  ;;  %v1288_v28 = vld [vmem:[%s2658_s8 + $0x50] sm:$0xff] }
 0x128   : > { %1122 = vst.msk [vmem:[%s2658_s8 + $0x70] sm:$0xff] %vm299_vm1, %v1106_v50  ;;  %v1104_v56 = vadd.f32 %v1088_v53, %v1061_v29  ;;  %1310 = vst.msk [vmem:[%s2658_s8] sm:$0xff] %vm299_vm1, %v1294_v51  ;;  %v1297_v57 = vadd.f32 %v2271_v54, %v1281_v55  ;;  %v2289_v58 = vpop.f32.mrf.mxu0 }
 0x129   : > { %v1091_v59 = vld [vmem:[%s2658_s8 + $0x78] sm:$0xff]  ;;  %v1218_v60 = vpop.f32.mrf.mxu1  ;;  %v1286_v33 = vld [vmem:[%s2658_s8 + $0x40] sm:$0xff] }
 0x12a   : > { %1120 = vst.msk [vmem:[%s2658_s8 + $0x60] sm:$0xff] %vm299_vm1, %v1104_v56  ;;  %v1107_v62 = vadd.f32 %v2265_v34, %v1091_v59  ;;  %1313 = vst.msk [vmem:[%s2658_s8 + $0x18] sm:$0xff] %vm299_vm1, %v1297_v57  ;;  %v1295_v63 = vadd.f32 %v1279_v61, %v1218_v60  ;;  %v1420_v0 = vpop.f32.mrf.mxu0 }
 0x12b   : > { %v1089_v1 = vld [vmem:[%s2658_s8 + $0x68] sm:$0xff]  ;;  %v2274_v2 = vpop.f32.mrf.mxu1  ;;  %v1289_v39 = vld [vmem:[%s2658_s8 + $0x58] sm:$0xff] }
 0x12c   : > { %1123 = vst.msk [vmem:[%s2658_s8 + $0x78] sm:$0xff] %vm299_vm1, %v1107_v62  ;;  %v1105_v4 = vadd.f32 %v1089_v1, %v1064_v40  ;;  %1311 = vst.msk [vmem:[%s2658_s8 + $0x8] sm:$0xff] %vm299_vm1, %v1295_v63  ;;  %v1300_v5 = vadd.f32 %v2274_v2, %v1284_v3  ;;  %v2292_v7 = vpop.f32.mrf.mxu0 }
 0x12d   : > { %v1482_v8 = vld [vmem:[%s2658_s8 + $0x10] sm:$0xff]  ;;  %v1231_v9 = vpop.f32.mrf.mxu1  ;;  %v1287_v45 = vld [vmem:[%s2658_s8 + $0x48] sm:$0xff] }
 0x12e   : > { %1121 = vst.msk [vmem:[%s2658_s8 + $0x68] sm:$0xff] %vm299_vm1, %v1105_v4  ;;  %v1498_v12 = vadd.f32 %v2288_v46, %v1482_v8  ;;  %1316 = vst.msk [vmem:[%s2658_s8 + $0x30] sm:$0xff] %vm299_vm1, %v1300_v5  ;;  %v1298_v13 = vadd.f32 %v1282_v11, %v1231_v9  ;;  %v1433_v14 = vpop.f32.mrf.mxu0 }
 0x12f   : > { %v1480_v16 = vld [vmem:[%s2658_s8] sm:$0xff]  ;;  %v2275_v17 = vpop.f32.mrf.mxu1  ;;  %v1292_v51 = vld [vmem:[%s2658_s8 + $0x70] sm:$0xff] }
 0x130   : > { %1514 = vst.msk [vmem:[%s2658_s8 + $0x10] sm:$0xff] %vm299_vm1, %v1498_v12  ;;  %v1496_v20 = vadd.f32 %v1480_v16, %v1417_v52  ;;  %1314 = vst.msk [vmem:[%s2658_s8 + $0x20] sm:$0xff] %vm299_vm1, %v1298_v13  ;;  %v1301_v15 = vadd.f32 %v2275_v17, %v1285_v19  ;;  %v2293_v21 = vpop.f32.mrf.mxu0 }
 0x131   : > { %v1483_v22 = vld [vmem:[%s2658_s8 + $0x18] sm:$0xff]  ;;  %v1234_v23 = vpop.f32.mrf.mxu1  ;;  %v1290_v57 = vld [vmem:[%s2658_s8 + $0x60] sm:$0xff] }
 0x132   : > { %1512 = vst.msk [vmem:[%s2658_s8] sm:$0xff] %vm299_vm1, %v1496_v20  ;;  %v1499_v26 = vadd.f32 %v2289_v58, %v1483_v22  ;;  %1317 = vst.msk [vmem:[%s2658_s8 + $0x38] sm:$0xff] %vm299_vm1, %v1301_v15  ;;  %v1299_v6 = vadd.f32 %v1283_v25, %v1234_v23  ;;  %v1436_v24 = vpop.f32.mrf.mxu0 }
 0x133   : > { %v1481_v10 = vld [vmem:[%s2658_s8 + $0x8] sm:$0xff]  ;;  %v2278_v27 = vpop.f32.mrf.mxu1  ;;  %v1293_v63 = vld [vmem:[%s2658_s8 + $0x78] sm:$0xff] }
 0x134   : > { %1515 = vst.msk [vmem:[%s2658_s8 + $0x18] sm:$0xff] %vm299_vm1, %v1499_v26  ;;  %v1497_v29 = vadd.f32 %v1481_v10, %v1420_v0  ;;  %1315 = vst.msk [vmem:[%s2658_s8 + $0x28] sm:$0xff] %vm299_vm1, %v1299_v6  ;;  %v1304_v18 = vadd.f32 %v2278_v27, %v1288_v28  ;;  %v2296_v30 = vpop.f32.mrf.mxu0 }
 0x135   : > { %v1486_v31 = vld [vmem:[%s2658_s8 + $0x30] sm:$0xff]  ;;  %v1247_v32 = vpop.f32.mrf.mxu1  ;;  %v1291_v5 = vld [vmem:[%s2658_s8 + $0x68] sm:$0xff] }
 0x136   : > { %1513 = vst.msk [vmem:[%s2658_s8 + $0x8] sm:$0xff] %vm299_vm1, %v1497_v29  ;;  %v1502_v34 = vadd.f32 %v2292_v7, %v1486_v31  ;;  %1320 = vst.msk [vmem:[%s2658_s8 + $0x50] sm:$0xff] %vm299_vm1, %v1304_v18  ;;  %v1302_v35 = vadd.f32 %v1286_v33, %v1247_v32  ;;  %v1449_v36 = vpop.f32.mrf.mxu0 }
 0x137   : > { %v1484_v37 = vld [vmem:[%s2658_s8 + $0x20] sm:$0xff]  ;;  %v2279_v38 = vpop.f32.mrf.mxu1  ;;  %v1684_v13 = vld [vmem:[%s2658_s8 + $0x10] sm:$0xff] }
 0x138   : > { %1518 = vst.msk [vmem:[%s2658_s8 + $0x30] sm:$0xff] %vm299_vm1, %v1502_v34  ;;  %v1500_v40 = vadd.f32 %v1484_v37, %v1433_v14  ;;  %1318 = vst.msk [vmem:[%s2658_s8 + $0x40] sm:$0xff] %vm299_vm1, %v1302_v35  ;;  %v1305_v41 = vadd.f32 %v2279_v38, %v1289_v39  ;;  %v2297_v42 = vpop.f32.mrf.mxu0 }
 0x139   : > { %v1487_v43 = vld [vmem:[%s2658_s8 + $0x38] sm:$0xff]  ;;  %v1250_v44 = vpop.f32.mrf.mxu1  ;;  %v1682_v15 = vld [vmem:[%s2658_s8] sm:$0xff] }
 0x13a   : > { %1516 = vst.msk [vmem:[%s2658_s8 + $0x20] sm:$0xff] %vm299_vm1, %v1500_v40  ;;  %v1503_v46 = vadd.f32 %v2293_v21, %v1487_v43  ;;  %1321 = vst.msk [vmem:[%s2658_s8 + $0x58] sm:$0xff] %vm299_vm1, %v1305_v41  ;;  %v1303_v47 = vadd.f32 %v1287_v45, %v1250_v44  ;;  %v1452_v48 = vpop.f32.mrf.mxu0 }
 0x13b   : > { %v1485_v49 = vld [vmem:[%s2658_s8 + $0x28] sm:$0xff]  ;;  %v2282_v50 = vpop.f32.mrf.mxu1  ;;  %v1685_v6 = vld [vmem:[%s2658_s8 + $0x18] sm:$0xff] }
 0x13c   : > { %1519 = vst.msk [vmem:[%s2658_s8 + $0x38] sm:$0xff] %vm299_vm1, %v1503_v46  ;;  %v1501_v52 = vadd.f32 %v1485_v49, %v1436_v24  ;;  %1319 = vst.msk [vmem:[%s2658_s8 + $0x48] sm:$0xff] %vm299_vm1, %v1303_v47  ;;  %v1308_v53 = vadd.f32 %v2282_v50, %v1292_v51  ;;  %v2300_v54 = vpop.f32.mrf.mxu0 }
 0x13d   : > { %v1490_v55 = vld [vmem:[%s2658_s8 + $0x50] sm:$0xff]  ;;  %v1263_v56 = vpop.f32.mrf.mxu1  ;;  %v1683_v18 = vld [vmem:[%s2658_s8 + $0x8] sm:$0xff] }
 0x13e   : > { %1517 = vst.msk [vmem:[%s2658_s8 + $0x28] sm:$0xff] %vm299_vm1, %v1501_v52  ;;  %v1506_v58 = vadd.f32 %v2296_v30, %v1490_v55  ;;  %1324 = vst.msk [vmem:[%s2658_s8 + $0x70] sm:$0xff] %vm299_vm1, %v1308_v53  ;;  %v1306_v59 = vadd.f32 %v1290_v57, %v1263_v56  ;;  %v1465_v60 = vpop.f32.mrf.mxu0 }
 0x13f   : > { %v1488_v61 = vld [vmem:[%s2658_s8 + $0x40] sm:$0xff]  ;;  %v2283_v62 = vpop.f32.mrf.mxu1  ;;  %v1688_v35 = vld [vmem:[%s2658_s8 + $0x30] sm:$0xff] }
 0x140   : > { %1522 = vst.msk [vmem:[%s2658_s8 + $0x50] sm:$0xff] %vm299_vm1, %v1506_v58  ;;  %v1504_v0 = vadd.f32 %v1488_v61, %v1449_v36  ;;  %1322 = vst.msk [vmem:[%s2658_s8 + $0x60] sm:$0xff] %vm299_vm1, %v1306_v59  ;;  %v1309_v1 = vadd.f32 %v2283_v62, %v1293_v63  ;;  %v2301_v2 = vpop.f32.mrf.mxu0 }
 0x141   : > { %v1491_v3 = vld [vmem:[%s2658_s8 + $0x58] sm:$0xff]  ;;  %v1266_v4 = vpop.f32.mrf.mxu1  ;;  %v1686_v41 = vld [vmem:[%s2658_s8 + $0x20] sm:$0xff] }
 0x142   : > { %1520 = vst.msk [vmem:[%s2658_s8 + $0x40] sm:$0xff] %vm299_vm1, %v1504_v0  ;;  %v1507_v7 = vadd.f32 %v2297_v42, %v1491_v3  ;;  %1325 = vst.msk [vmem:[%s2658_s8 + $0x78] sm:$0xff] %vm299_vm1, %v1309_v1  ;;  %v1307_v8 = vadd.f32 %v1291_v5, %v1266_v4  ;;  %v1468_v9 = vpop.f32.mrf.mxu0 }
 0x143   : > { %v1489_v11 = vld [vmem:[%s2658_s8 + $0x48] sm:$0xff]  ;;  %v2306_v12 = vpop.f32.mrf.mxu1  ;;  %v1689_v47 = vld [vmem:[%s2658_s8 + $0x38] sm:$0xff] }
 0x144   : > { %1523 = vst.msk [vmem:[%s2658_s8 + $0x58] sm:$0xff] %vm299_vm1, %v1507_v7  ;;  %v1505_v14 = vadd.f32 %v1489_v11, %v1452_v48  ;;  %1323 = vst.msk [vmem:[%s2658_s8 + $0x68] sm:$0xff] %vm299_vm1, %v1307_v8  ;;  %v1700_v16 = vadd.f32 %v2306_v12, %v1684_v13  ;;  %v2324_v17 = vpop.f32.mrf.mxu0 }
 0x145   : > { %v1494_v19 = vld [vmem:[%s2658_s8 + $0x70] sm:$0xff]  ;;  %v1619_v20 = vpop.f32.mrf.mxu1  ;;  %v1687_v53 = vld [vmem:[%s2658_s8 + $0x28] sm:$0xff] }
 0x146   : > { %1521 = vst.msk [vmem:[%s2658_s8 + $0x48] sm:$0xff] %vm299_vm1, %v1505_v14  ;;  %v1510_v21 = vadd.f32 %v2300_v54, %v1494_v19  ;;  %1716 = vst.msk [vmem:[%s2658_s8 + $0x10] sm:$0xff] %vm299_vm1, %v1700_v16  ;;  %v1698_v22 = vadd.f32 %v1682_v15, %v1619_v20  ;;  %v1821_v23 = vpop.f32.mrf.mxu0 }
 0x147   : > { %v1492_v25 = vld [vmem:[%s2658_s8 + $0x60] sm:$0xff]  ;;  %v2307_v26 = vpop.f32.mrf.mxu1  ;;  %v1692_v59 = vld [vmem:[%s2658_s8 + $0x50] sm:$0xff] }
 0x148   : > { %1526 = vst.msk [vmem:[%s2658_s8 + $0x70] sm:$0xff] %vm299_vm1, %v1510_v21  ;;  %v1508_v24 = vadd.f32 %v1492_v25, %v1465_v60  ;;  %1714 = vst.msk [vmem:[%s2658_s8] sm:$0xff] %vm299_vm1, %v1698_v22  ;;  %v1701_v10 = vadd.f32 %v2307_v26, %v1685_v6  ;;  %v2325_v27 = vpop.f32.mrf.mxu0 }
 0x149   : > { %v1495_v28 = vld [vmem:[%s2658_s8 + $0x78] sm:$0xff]  ;;  %v1622_v29 = vpop.f32.mrf.mxu1  ;;  %v1690_v1 = vld [vmem:[%s2658_s8 + $0x40] sm:$0xff] }
 0x14a   : > { %1524 = vst.msk [vmem:[%s2658_s8 + $0x60] sm:$0xff] %vm299_vm1, %v1508_v24  ;;  %v1511_v30 = vadd.f32 %v2301_v2, %v1495_v28  ;;  %1717 = vst.msk [vmem:[%s2658_s8 + $0x18] sm:$0xff] %vm299_vm1, %v1701_v10  ;;  %v1699_v31 = vadd.f32 %v1683_v18, %v1622_v29  ;;  %v1824_v32 = vpop.f32.mrf.mxu0 }
 0x14b   : > { %v1493_v33 = vld [vmem:[%s2658_s8 + $0x68] sm:$0xff]  ;;  %v2310_v34 = vpop.f32.mrf.mxu1  ;;  %v1693_v8 = vld [vmem:[%s2658_s8 + $0x58] sm:$0xff] }
 0x14c   : > { %1527 = vst.msk [vmem:[%s2658_s8 + $0x78] sm:$0xff] %vm299_vm1, %v1511_v30  ;;  %v1509_v36 = vadd.f32 %v1493_v33, %v1468_v9  ;;  %1715 = vst.msk [vmem:[%s2658_s8 + $0x8] sm:$0xff] %vm299_vm1, %v1699_v31  ;;  %v1704_v37 = vadd.f32 %v2310_v34, %v1688_v35  ;;  %v2328_v38 = vpop.f32.mrf.mxu0 }
 0x14d   : > { %v1886_v39 = vld [vmem:[%s2658_s8 + $0x10] sm:$0xff]  ;;  %v1635_v40 = vpop.f32.mrf.mxu1  ;;  %v1691_v16 = vld [vmem:[%s2658_s8 + $0x48] sm:$0xff] }
 0x14e   : > { %1525 = vst.msk [vmem:[%s2658_s8 + $0x68] sm:$0xff] %vm299_vm1, %v1509_v36  ;;  %v1902_v42 = vadd.f32 %v2324_v17, %v1886_v39  ;;  %1720 = vst.msk [vmem:[%s2658_s8 + $0x30] sm:$0xff] %vm299_vm1, %v1704_v37  ;;  %v1702_v43 = vadd.f32 %v1686_v41, %v1635_v40  ;;  %v1837_v44 = vpop.f32.mrf.mxu0 }
 0x14f   : > { %v1884_v45 = vld [vmem:[%s2658_s8] sm:$0xff]  ;;  %v2311_v46 = vpop.f32.mrf.mxu1  ;;  %v1696_v21 = vld [vmem:[%s2658_s8 + $0x70] sm:$0xff] }
 0x150   : > { %1918 = vst.msk [vmem:[%s2658_s8 + $0x10] sm:$0xff] %vm299_vm1, %v1902_v42  ;;  %v1900_v48 = vadd.f32 %v1884_v45, %v1821_v23  ;;  %1718 = vst.msk [vmem:[%s2658_s8 + $0x20] sm:$0xff] %vm299_vm1, %v1702_v43  ;;  %v1705_v49 = vadd.f32 %v2311_v46, %v1689_v47  ;;  %v2329_v50 = vpop.f32.mrf.mxu0 }
 0x151   : > { %v1887_v51 = vld [vmem:[%s2658_s8 + $0x18] sm:$0xff]  ;;  %v1638_v52 = vpop.f32.mrf.mxu1  ;;  %v1694_v24 = vld [vmem:[%s2658_s8 + $0x60] sm:$0xff] }
 0x152   : > { %1916 = vst.msk [vmem:[%s2658_s8] sm:$0xff] %vm299_vm1, %v1900_v48  ;;  %v1903_v54 = vadd.f32 %v2325_v27, %v1887_v51  ;;  %1721 = vst.msk [vmem:[%s2658_s8 + $0x38] sm:$0xff] %vm299_vm1, %v1705_v49  ;;  %v1703_v55 = vadd.f32 %v1687_v53, %v1638_v52  ;;  %v1840_v56 = vpop.f32.mrf.mxu0 }
 0x153   : > { %v1885_v57 = vld [vmem:[%s2658_s8 + $0x8] sm:$0xff]  ;;  %v2314_v58 = vpop.f32.mrf.mxu1  ;;  %v1697_v18 = vld [vmem:[%s2658_s8 + $0x78] sm:$0xff] }
 0x154   : > { %1919 = vst.msk [vmem:[%s2658_s8 + $0x18] sm:$0xff] %vm299_vm1, %v1903_v54  ;;  %v1901_v60 = vadd.f32 %v1885_v57, %v1824_v32  ;;  %1719 = vst.msk [vmem:[%s2658_s8 + $0x28] sm:$0xff] %vm299_vm1, %v1703_v55  ;;  %v1708_v61 = vadd.f32 %v2314_v58, %v1692_v59  ;;  %v2332_v62 = vpop.f32.mrf.mxu0 }
 0x155   : > { %v1890_v63 = vld [vmem:[%s2658_s8 + $0x30] sm:$0xff]  ;;  %v1651_v0 = vpop.f32.mrf.mxu1  ;;  %v1695_v35 = vld [vmem:[%s2658_s8 + $0x68] sm:$0xff] }
 0x156   : > { %1917 = vst.msk [vmem:[%s2658_s8 + $0x8] sm:$0xff] %vm299_vm1, %v1901_v60  ;;  %v1906_v2 = vadd.f32 %v2328_v38, %v1890_v63  ;;  %1724 = vst.msk [vmem:[%s2658_s8 + $0x50] sm:$0xff] %vm299_vm1, %v1708_v61  ;;  %v1706_v3 = vadd.f32 %v1690_v1, %v1651_v0  ;;  %v1853_v4 = vpop.f32.mrf.mxu0 }
 0x157   : > { %v1888_v5 = vld [vmem:[%s2658_s8 + $0x20] sm:$0xff]  ;;  %v2315_v7 = vpop.f32.mrf.mxu1 }
 0x158   : > { %1922 = vst.msk [vmem:[%s2658_s8 + $0x30] sm:$0xff] %vm299_vm1, %v1906_v2  ;;  %v1904_v9 = vadd.f32 %v1888_v5, %v1837_v44  ;;  %1722 = vst.msk [vmem:[%s2658_s8 + $0x40] sm:$0xff] %vm299_vm1, %v1706_v3  ;;  %v1709_v11 = vadd.f32 %v2315_v7, %v1693_v8  ;;  %v2333_v12 = vpop.f32.mrf.mxu0 }
 0x159   : > { %v1891_v13 = vld [vmem:[%s2658_s8 + $0x38] sm:$0xff]  ;;  %v1654_v14 = vpop.f32.mrf.mxu1 }
 0x15a   : > { %1920 = vst.msk [vmem:[%s2658_s8 + $0x20] sm:$0xff] %vm299_vm1, %v1904_v9  ;;  %v1907_v17 = vadd.f32 %v2329_v50, %v1891_v13  ;;  %1725 = vst.msk [vmem:[%s2658_s8 + $0x58] sm:$0xff] %vm299_vm1, %v1709_v11  ;;  %v1707_v19 = vadd.f32 %v1691_v16, %v1654_v14  ;;  %v1856_v22 = vpop.f32.mrf.mxu0 }
 0x15b   : > { %v1889_v20 = vld [vmem:[%s2658_s8 + $0x28] sm:$0xff]  ;;  %v2318_v15 = vpop.f32.mrf.mxu1 }
 0x15c   : > { %1923 = vst.msk [vmem:[%s2658_s8 + $0x38] sm:$0xff] %vm299_vm1, %v1907_v17  ;;  %v1905_v23 = vadd.f32 %v1889_v20, %v1840_v56  ;;  %1723 = vst.msk [vmem:[%s2658_s8 + $0x48] sm:$0xff] %vm299_vm1, %v1707_v19  ;;  %v1712_v25 = vadd.f32 %v2318_v15, %v1696_v21  ;;  %v2336_v30 = vpop.f32.mrf.mxu0 }
 0x15d   : > { %v1894_v26 = vld [vmem:[%s2658_s8 + $0x50] sm:$0xff]  ;;  %v1667_v6 = vpop.f32.mrf.mxu1 }
 0x15e   : > { %1921 = vst.msk [vmem:[%s2658_s8 + $0x28] sm:$0xff] %vm299_vm1, %v1905_v23  ;;  %v1910_v10 = vadd.f32 %v2332_v62, %v1894_v26  ;;  %1728 = vst.msk [vmem:[%s2658_s8 + $0x70] sm:$0xff] %vm299_vm1, %v1712_v25  ;;  %v1710_v27 = vadd.f32 %v1694_v24, %v1667_v6  ;;  %v1869_v39 = vpop.f32.mrf.mxu0 }
 0x15f   : > { %v1892_v28 = vld [vmem:[%s2658_s8 + $0x40] sm:$0xff]  ;;  %v2319_v29 = vpop.f32.mrf.mxu1 }
 0x160   : > { %1926 = vst.msk [vmem:[%s2658_s8 + $0x50] sm:$0xff] %vm299_vm1, %v1910_v10  ;;  %v1908_v31 = vadd.f32 %v1892_v28, %v1853_v4  ;;  %1726 = vst.msk [vmem:[%s2658_s8 + $0x60] sm:$0xff] %vm299_vm1, %v1710_v27  ;;  %v1713_v32 = vadd.f32 %v2319_v29, %v1697_v18  ;;  %v2337_v44 = vpop.f32.mrf.mxu0 }
 0x161   : > { %v1895_v33 = vld [vmem:[%s2658_s8 + $0x58] sm:$0xff]  ;;  %v1670_v34 = vpop.f32.mrf.mxu1 }
 0x162   : > { %1924 = vst.msk [vmem:[%s2658_s8 + $0x40] sm:$0xff] %vm299_vm1, %v1908_v31  ;;  %v1911_v36 = vadd.f32 %v2333_v12, %v1895_v33  ;;  %1729 = vst.msk [vmem:[%s2658_s8 + $0x78] sm:$0xff] %vm299_vm1, %v1713_v32  ;;  %v1711_v37 = vadd.f32 %v1695_v35, %v1670_v34  ;;  %v1872_v48 = vpop.f32.mrf.mxu0 }
 0x163   : > { %v1893_v38 = vld [vmem:[%s2658_s8 + $0x48] sm:$0xff] }
 0x164   : > { %1927 = vst.msk [vmem:[%s2658_s8 + $0x58] sm:$0xff] %vm299_vm1, %v1911_v36  ;;  %v1909_v40 = vadd.f32 %v1893_v38, %v1856_v22  ;;  %1727 = vst.msk [vmem:[%s2658_s8 + $0x68] sm:$0xff] %vm299_vm1, %v1711_v37 }
 0x165   : > { %v1898_v41 = vld [vmem:[%s2658_s8 + $0x70] sm:$0xff] }
 0x166   : > { %1925 = vst.msk [vmem:[%s2658_s8 + $0x48] sm:$0xff] %vm299_vm1, %v1909_v40  ;;  %v1914_v42 = vadd.f32 %v2336_v30, %v1898_v41 }
 0x167   : > { %v1896_v43 = vld [vmem:[%s2658_s8 + $0x60] sm:$0xff] }
 0x168   : > { %1930 = vst.msk [vmem:[%s2658_s8 + $0x70] sm:$0xff] %vm299_vm1, %v1914_v42  ;;  %v1912_v45 = vadd.f32 %v1896_v43, %v1869_v39 }
 0x169   : > { %v1899_v46 = vld [vmem:[%s2658_s8 + $0x78] sm:$0xff] }
 0x16a   : > { %1928 = vst.msk [vmem:[%s2658_s8 + $0x60] sm:$0xff] %vm299_vm1, %v1912_v45  ;;  %v1915_v47 = vadd.f32 %v2337_v44, %v1899_v46 }
 0x16b   : > { %v1897_v49 = vld [vmem:[%s2658_s8 + $0x68] sm:$0xff] }
 0x16c   : > { %1931 = vst.msk [vmem:[%s2658_s8 + $0x78] sm:$0xff] %vm299_vm1, %v1915_v47  ;;  %v1913_v50 = vadd.f32 %v1897_v49, %v1872_v48 }
 0x16e   : > { %1929 = vst.msk [vmem:[%s2658_s8 + $0x68] sm:$0xff] %vm299_vm1, %v1913_v50 }
 0x16f PF: > { %s12_s9 = sadd.s32 1, %s2364_s9  }
 0x170   : > { %p9_p4 = scmp.ge.s32.totalorder %s12_s9, 4  }
 0x172   :  { %11 = sbr.rel (!%p9_p4) target bundleno = 1 (0x1), region = 66 }

</bundles_post_ra>
